<compile_context>
chip_gen: v7x
topology: tpu7x:2x2x1
jax: 0.10.0
libtpu: 0.0.40
codegen_flags: <defaults>
</compile_context>

<pallas_src>
from functools import partial

import jax
import jax.numpy as jnp
from jax import lax
from jax.experimental import pallas as pl
from jax.experimental.pallas import tpu as pltpu

_LANES = 128


def _sorted_stats(p_col, xy, n, need_grad):
    """Sum of squared sorted differences (and its projection gradient) for one cloud pair.

    p_col : (D, 1)  projection column.
    xy    : (D, 2N) lane-dense stacked [x^T | y^T] (dims on sublanes, points on lanes).
    Returns (ss (1,1), grad_ss (D,1) or None).
    """
    # Index masks generated per call so their live range is bounded by one iteration.
    lane_idx = lax.broadcasted_iota(jnp.int32, (n, n), 1)              # i (and sorted slot k)
    tie_lt = lane_idx < lax.broadcasted_iota(jnp.int32, (n, n), 0)     # i < j (stable tie-break)

    # Single lane-dense projection matmul for both clouds: (1,D)·(D,2N) -> (1,2N).
    vrow = lax.dot_general(p_col, xy, (((0,), (0,)), ((), ())),
                           preferred_element_type=jnp.float32)

    def phase(vals_row, pts_dn):
        # vals_row : (1, N) projected values; pts_dn : (D, N) points (lane-dense).
        r_bc = jnp.broadcast_to(vals_row, (n, n))        # r_bc[j, i] = v[i]
        c_bc = jnp.transpose(r_bc)                       # c_bc[j, i] = v[j] (bit-identical, XLU)
        # Element i precedes element j in the ascending stable sort (diagonal is false):
        cmp = (r_bc < c_bc) | ((r_bc == c_bc) & tie_lt)
        rank = jnp.sum(cmp.astype(jnp.int32), axis=1, keepdims=True)   # (N,1) sorted slot of j
        onehot = (rank == lane_idx).astype(jnp.float32)                # (N,N): j -> slot k
        svals = jnp.sum(onehot * c_bc, axis=0, keepdims=True)          # (1,N) sorted projections
        if not need_grad:
            return svals, None
        # Points reordered to sorted slots: column k = point whose projection has rank k.
        spts = lax.dot_general(pts_dn, onehot, (((1,), (0,)), ((), ())),
                               preferred_element_type=jnp.float32)     # (D,N) -> one vreg
        return svals, spts

    sx, xs = phase(vrow[:, :n], xy[:, :n])
    sy, ys = phase(vrow[:, n:], xy[:, n:])
    d = sx - sy                                          # (1, N) lane-dense
    ss = jnp.sum(d * d, axis=1, keepdims=True)           # (1, 1)
    if not need_grad:
        return ss, None
    # d ss / d p = 2 * sum_k (x_sorted[:,k] - y_sorted[:,k]) * d[k]  (sort perm held constant)
    grad_ss = 2.0 * jnp.sum((xs - ys) * d, axis=1, keepdims=True)      # (D, 1)
    return ss, grad_ss


def _maxsw_fused_kernel(xy_ref, p0_ref, sumsq_ref, proj_ref, *,
                        num_iters, lr, optimizer, squared_loss, batch, block_batch):
    """Processes `block_batch` batch elements per grid step, fully fused.

    xy_ref    : (bb, D, 2N)  lane-dense stacked [x^T | y^T]
    p0_ref    : (bb, D, 1)   initial unit projections (column layout)
    sumsq_ref : (bb, 1, 128) lane-broadcast final sum_k (sort(xp)-sort(yp))^2
    proj_ref  : (bb, D, 128) lane-broadcast final projection
    """
    D = xy_ref.shape[1]
    n = xy_ref.shape[2] // 2
    beta1, beta2, eps = 0.9, 0.999, 1e-8

    for b in range(block_batch):
        xy = xy_ref[b]                        # (D, 2N): ~2 vregs, resident for whole element
        p0 = p0_ref[b]                        # (D, 1)

        def grad_obj(p_col, xy=xy):
            ss, gss = _sorted_stats(p_col, xy, n, True)
            if squared_loss:                  # objective = mean_b(-ss_b)
                return gss * (-1.0 / batch)
            # objective = mean_b(-sqrt(ss_b)); guard ss == 0 (grad is 0 there anyway)
            return gss * (lax.rsqrt(jnp.maximum(ss, 1e-30)) * (-0.5 / batch))

        if optimizer == "adam":
            def body(_, carry):
                p, m, v, b1t, b2t = carry
                g = grad_obj(p)
                m = beta1 * m + (1.0 - beta1) * g
                v = beta2 * v + (1.0 - beta2) * (g * g)
                b1t = b1t * beta1             # beta1^t, carried (no transcendentals)
                b2t = b2t * beta2
                mhat = m / (1.0 - b1t)
                vhat = v / (1.0 - b2t)
                p = p - lr * mhat / (jnp.sqrt(vhat) + eps)
                # proj_onto_unit_sphere after every optimizer step (rsqrt -> EUP slot)
                p = p * lax.rsqrt(jnp.sum(p * p, axis=0, keepdims=True))
                return p, m, v, b1t, b2t

            zero = jnp.zeros_like(p0)
            one = jnp.ones((1, 1), jnp.float32)
            p, _, _, _, _ = lax.fori_loop(0, num_iters, body,
                                          (p0, zero, zero, one, one))
        else:                                  # "sgd" (no momentum, matches torch default)
            def body(_, p):
                p = p - lr * grad_obj(p)
                return p * lax.rsqrt(jnp.sum(p * p, axis=0, keepdims=True))

            p = lax.fori_loop(0, num_iters, body, p0)

        # Final evaluation with the optimized projection (no gradient work).
        ss, _ = _sorted_stats(p, xy, n, False)
        sumsq_ref[b] = jnp.broadcast_to(ss, (1, sumsq_ref.shape[2]))
        proj_ref[b] = jnp.broadcast_to(p, (D, proj_ref.shape[2]))


def _pick_block_batch(batch):
    # Amortize the ~0.35 us/step grid overhead while keeping >=2 grid steps so the
    # "parallel" batch axis can still shard across v7x's two TensorCores.
    for bb in (8, 4, 2):
        if batch % bb == 0 and batch // bb >= 2:
            return bb
    return 1


@partial(jax.jit, static_argnames=("optimizer", "lr", "num_iters", "squared_loss"))
def _maxsw_pallas(x, y, proj0, *, optimizer, lr, num_iters, squared_loss):
    """Fused optimize+evaluate. Returns (sumsq [B], final proj [B, D])."""
    B, N, D = x.shape
    # Lane-dense layout: points on the 128-lane axis, point-dim on sublanes;
    # x and y stacked so each element reads one (D, 2N) slab.
    xy = jnp.concatenate((jnp.swapaxes(x, 1, 2), jnp.swapaxes(y, 1, 2)), axis=2)  # (B, D, 2N)
    p0 = jnp.swapaxes(proj0, 1, 2)                                                # (B, D, 1)

    bb = _pick_block_batch(B)
    grid = (B // bb,)

    kernel = partial(_maxsw_fused_kernel, num_iters=num_iters, lr=lr,
                     optimizer=optimizer, squared_loss=squared_loss,
                     batch=B, block_batch=bb)

    sumsq, proj_slab = pl.pallas_call(
        kernel,
        out_shape=(jax.ShapeDtypeStruct((B, 1, _LANES), jnp.float32),
                   jax.ShapeDtypeStruct((B, D, _LANES), jnp.float32)),
        grid_spec=pltpu.PrefetchScalarGridSpec(
            num_scalar_prefetch=0,
            grid=grid,
            in_specs=[
                pl.BlockSpec((bb, D, 2 * N), lambda g: (g, 0, 0)),
                pl.BlockSpec((bb, D, 1), lambda g: (g, 0, 0)),
            ],
            out_specs=[
                pl.BlockSpec((bb, 1, _LANES), lambda g: (g, 0, 0)),
                pl.BlockSpec((bb, D, _LANES), lambda g: (g, 0, 0)),
            ],
        ),
        compiler_params=pltpu.CompilerParams(
            dimension_semantics=("parallel",)),   # batch shards across v7x's 2 TensorCores
    )(xy, p0)
    return sumsq[:, 0, 0], proj_slab[:, :, 0]


def maxsw_forward(x, y, key, *, max_sw_optimizer="adam", max_sw_lr=1e-2,
                  max_sw_num_iters=5, squared_loss=False, detach=True):
    """JAX/Pallas equivalent of MaxSW.forward (num_projections == 1, degree == 2)."""
    del detach  # only affects grads w.r.t. x / y, which are not produced here
    if max_sw_optimizer not in ("adam", "sgd"):
        raise Exception("Optimizer has had implementation yet.")
    B, N, D = x.shape

    # minibatch_rand_projections(batch, dim, num_projections=1) + unit-sphere normalisation
    proj = jax.random.normal(key, (B, 1, D), dtype=jnp.float32)
    proj = proj / jnp.sqrt(jnp.sum(proj ** 2, axis=2, keepdims=True))

    sumsq, proj_final = _maxsw_pallas(
        x.astype(jnp.float32), y.astype(jnp.float32), proj,
        optimizer=max_sw_optimizer, lr=float(max_sw_lr),
        num_iters=int(max_sw_num_iters), squared_loss=bool(squared_loss))

    first_moment = jnp.sqrt(sumsq)            # (B,)  degree=2, num_projs=1
    loss = jnp.mean(first_moment)
    return {"loss": loss, "proj": proj_final[:, None, :]}


def _reference_loss(x, y, proj):
    """Pure-JAX reference of the final loss (jnp.sort based) for validation."""
    xproj = jnp.einsum("bnd,bpd->bnp", x, proj, precision=lax.Precision.HIGHEST)  # (B, N, 1)
    yproj = jnp.einsum("bnd,bpd->bnp", y, proj, precision=lax.Precision.HIGHEST)
    sx = jnp.sort(jnp.swapaxes(xproj, 1, 2), axis=2)                              # (B, 1, N)
    sy = jnp.sort(jnp.swapaxes(yproj, 1, 2), axis=2)
    s = jnp.sum(jnp.abs(sx - sy) ** 2.0, axis=2)                                  # (B, 1)
    first_moment = jnp.sqrt(jnp.mean(s, axis=1))                                  # (B,)
    return jnp.mean(first_moment)


if __name__ == "__main__":
    B, N, D = 2, 128, 8
    key = jax.random.PRNGKey(0)
    kx, ky, kp = jax.random.split(key, 3)
    x = jax.random.normal(kx, (B, N, D), dtype=jnp.float32)
    y = jax.random.normal(ky, (B, N, D), dtype=jnp.float32) * 0.8 + 0.3

    # Adam / sqrt-loss configuration (module defaults).
    out = maxsw_forward(x, y, kp, max_sw_optimizer="adam", max_sw_lr=1e-2,
                        max_sw_num_iters=5, squared_loss=False, detach=True)
    loss = jax.block_until_ready(out["loss"])
    proj = jax.block_until_ready(out["proj"])
    assert proj.shape == (B, 1, D)
    assert bool(jnp.isfinite(loss))
    ref = _reference_loss(x, y, proj)
    assert jnp.allclose(loss, ref, rtol=1e-4, atol=1e-4), (loss, ref)

    # SGD / squared-loss configuration (exercise the other static branches).
    out2 = maxsw_forward(x, y, kp, max_sw_optimizer="sgd", max_sw_lr=1e-2,
                         max_sw_num_iters=3, squared_loss=True, detach=True)
    loss2 = jax.block_until_ready(out2["loss"])
    proj2 = jax.block_until_ready(out2["proj"])
    assert proj2.shape == (B, 1, D)
    assert bool(jnp.isfinite(loss2))
    ref2 = _reference_loss(x, y, proj2)
    assert jnp.allclose(loss2, ref2, rtol=1e-4, atol=1e-4), (loss2, ref2)

    print("KERNEL_OK")
</pallas_src>

<mosaic_0001>
module attributes {stable_mosaic.version = 11 : i64} {
  func.func @_maxsw_fused_kernel(%arg0: i32, %arg1: memref<1x8x256xf32, #tpu.memory_space<vmem>>, %arg2: memref<1x8x1xf32, #tpu.memory_space<vmem>>, %arg3: memref<1x1x128xf32, #tpu.memory_space<vmem>>, %arg4: memref<1x8x128xf32, #tpu.memory_space<vmem>>) attributes {dimension_semantics = [#tpu.dimension_semantics<parallel>], iteration_bounds = array<i64: 2>, scalar_prefetch = 0 : i64, scratch_operands = 0 : i64, tpu.core_type = #tpu.core_type<tc>, window_params = [{transform_indices = @transform_0, window_bounds = array<i64: 1, 8, 256>}, {transform_indices = @transform_1, window_bounds = array<i64: 1, 8, 1>}, {transform_indices = @transform_2, window_bounds = array<i64: 1, 1, 128>}, {transform_indices = @transform_3, window_bounds = array<i64: 1, 8, 128>}]} {
    %c0 = arith.constant 0 : index
    %c0_0 = arith.constant 0 : index
    %c0_1 = arith.constant 0 : index
    %0 = vector.load %arg1[%c0, %c0_0, %c0_1] : memref<1x8x256xf32, #tpu.memory_space<vmem>>, vector<1x8x256xf32>
    %1 = vector.shape_cast %0 : vector<1x8x256xf32> to vector<8x256xf32>
    %c0_2 = arith.constant 0 : index
    %c0_3 = arith.constant 0 : index
    %c0_4 = arith.constant 0 : index
    %2 = vector.load %arg2[%c0_2, %c0_3, %c0_4] : memref<1x8x1xf32, #tpu.memory_space<vmem>>, vector<1x8x1xf32>
    %3 = vector.shape_cast %2 : vector<1x8x1xf32> to vector<8x1xf32>
    %cst = arith.constant 0.000000e+00 : f32
    %4 = vector.broadcast %cst : f32 to vector<8x1xf32>
    %cst_5 = arith.constant 1.000000e+00 : f32
    %5 = vector.broadcast %cst_5 : f32 to vector<1x1xf32>
    %c0_i32 = arith.constant 0 : i32
    %c5_i32 = arith.constant 5 : i32
    %6 = arith.addi %c0_i32, %c5_i32 : i32
    %c1_i32 = arith.constant 1 : i32
    %7:5 = scf.for %arg5 = %c0_i32 to %6 step %c1_i32 iter_args(%arg6 = %3, %arg7 = %4, %arg8 = %4, %arg9 = %5, %arg10 = %5) -> (vector<8x1xf32>, vector<8x1xf32>, vector<8x1xf32>, vector<1x1xf32>, vector<1x1xf32>)  : i32 {
      %62 = tpu.iota {dimensions = array<i32: 1>} : vector<128x128xi32>
      %63 = tpu.iota {dimensions = array<i32: 0>} : vector<128x128xi32>
      %64 = arith.cmpi slt, %62, %63 : vector<128x128xi32>
      %cst_18 = arith.constant dense<0.000000e+00> : vector<1x256xf32>
      %65 = tpu.matmul %arg6, %1, %cst_18 {dimension_numbers = #tpu.dot_dimension_numbers<[0], [0], [1], [1], [0, 1, 1, 1], [], []>} : vector<8x1xf32>, vector<8x256xf32>, vector<1x256xf32> -> vector<1x256xf32>
      %66 = vector.extract_strided_slice %65 {offsets = [0, 0], sizes = [1, 128], strides = [1, 1]} : vector<1x256xf32> to vector<1x128xf32>
      %67 = vector.extract_strided_slice %1 {offsets = [0, 0], sizes = [8, 128], strides = [1, 1]} : vector<8x256xf32> to vector<8x128xf32>
      %68 = vector.shape_cast %66 : vector<1x128xf32> to vector<1x128xf32>
      %69 = vector.broadcast %68 : vector<1x128xf32> to vector<128x128xf32>
      %70 = tpu.transpose %69, [1, 0] : vector<128x128xf32> -> vector<128x128xf32>
      %71 = arith.cmpf olt, %69, %70 : vector<128x128xf32>
      %72 = arith.cmpf oeq, %69, %70 : vector<128x128xf32>
      %73 = arith.andi %72, %64 : vector<128x128xi1>
      %74 = arith.ori %71, %73 : vector<128x128xi1>
      %75 = arith.extui %74 : vector<128x128xi1> to vector<128x128xi32>
      %cst_19 = arith.constant dense<0> : vector<128xi32>
      %76 = vector.multi_reduction <add>, %75, %cst_19 [1] : vector<128x128xi32> to vector<128xi32>
      %77 = vector.shape_cast %76 : vector<128xi32> to vector<128x1xi32>
      %78 = vector.broadcast %77 : vector<128x1xi32> to vector<128x128xi32>
      %79 = arith.cmpi eq, %78, %62 : vector<128x128xi32>
      %80 = arith.extui %79 : vector<128x128xi1> to vector<128x128xi32>
      %81 = arith.sitofp %80 : vector<128x128xi32> to vector<128x128xf32>
      %82 = arith.mulf %81, %70 : vector<128x128xf32>
      %cst_20 = arith.constant dense<0.000000e+00> : vector<128xf32>
      %83 = vector.multi_reduction <add>, %82, %cst_20 [0] : vector<128x128xf32> to vector<128xf32>
      %84 = vector.shape_cast %83 : vector<128xf32> to vector<1x128xf32>
      %cst_21 = arith.constant dense<0.000000e+00> : vector<8x128xf32>
      %85 = tpu.matmul %67, %81, %cst_21 {dimension_numbers = #tpu.dot_dimension_numbers<[1], [0], [0], [1], [0, 0, 1, 1], [], []>} : vector<8x128xf32>, vector<128x128xf32>, vector<8x128xf32> -> vector<8x128xf32>
      %86 = vector.extract_strided_slice %65 {offsets = [0, 128], sizes = [1, 128], strides = [1, 1]} : vector<1x256xf32> to vector<1x128xf32>
      %87 = vector.extract_strided_slice %1 {offsets = [0, 128], sizes = [8, 128], strides = [1, 1]} : vector<8x256xf32> to vector<8x128xf32>
      %88 = vector.shape_cast %86 : vector<1x128xf32> to vector<1x128xf32>
      %89 = vector.broadcast %88 : vector<1x128xf32> to vector<128x128xf32>
      %90 = tpu.transpose %89, [1, 0] : vector<128x128xf32> -> vector<128x128xf32>
      %91 = arith.cmpf olt, %89, %90 : vector<128x128xf32>
      %92 = arith.cmpf oeq, %89, %90 : vector<128x128xf32>
      %93 = arith.andi %92, %64 : vector<128x128xi1>
      %94 = arith.ori %91, %93 : vector<128x128xi1>
      %95 = arith.extui %94 : vector<128x128xi1> to vector<128x128xi32>
      %cst_22 = arith.constant dense<0> : vector<128xi32>
      %96 = vector.multi_reduction <add>, %95, %cst_22 [1] : vector<128x128xi32> to vector<128xi32>
      %97 = vector.shape_cast %96 : vector<128xi32> to vector<128x1xi32>
      %98 = vector.broadcast %97 : vector<128x1xi32> to vector<128x128xi32>
      %99 = arith.cmpi eq, %98, %62 : vector<128x128xi32>
      %100 = arith.extui %99 : vector<128x128xi1> to vector<128x128xi32>
      %101 = arith.sitofp %100 : vector<128x128xi32> to vector<128x128xf32>
      %102 = arith.mulf %101, %90 : vector<128x128xf32>
      %cst_23 = arith.constant dense<0.000000e+00> : vector<128xf32>
      %103 = vector.multi_reduction <add>, %102, %cst_23 [0] : vector<128x128xf32> to vector<128xf32>
      %104 = vector.shape_cast %103 : vector<128xf32> to vector<1x128xf32>
      %cst_24 = arith.constant dense<0.000000e+00> : vector<8x128xf32>
      %105 = tpu.matmul %87, %101, %cst_24 {dimension_numbers = #tpu.dot_dimension_numbers<[1], [0], [0], [1], [0, 0, 1, 1], [], []>} : vector<8x128xf32>, vector<128x128xf32>, vector<8x128xf32> -> vector<8x128xf32>
      %106 = arith.subf %84, %104 : vector<1x128xf32>
      %107 = arith.mulf %106, %106 : vector<1x128xf32>
      %cst_25 = arith.constant dense<0.000000e+00> : vector<1xf32>
      %108 = vector.multi_reduction <add>, %107, %cst_25 [1] : vector<1x128xf32> to vector<1xf32>
      %109 = vector.shape_cast %108 : vector<1xf32> to vector<1x1xf32>
      %110 = arith.subf %85, %105 : vector<8x128xf32>
      %111 = vector.broadcast %106 : vector<1x128xf32> to vector<8x128xf32>
      %112 = arith.mulf %110, %111 : vector<8x128xf32>
      %cst_26 = arith.constant dense<0.000000e+00> : vector<8xf32>
      %113 = vector.multi_reduction <add>, %112, %cst_26 [1] : vector<8x128xf32> to vector<8xf32>
      %114 = vector.shape_cast %113 : vector<8xf32> to vector<8x1xf32>
      %cst_27 = arith.constant 2.000000e+00 : f32
      %115 = vector.broadcast %cst_27 : f32 to vector<8x1xf32>
      %116 = arith.mulf %115, %114 : vector<8x1xf32>
      %cst_28 = arith.constant 1.000000e-30 : f32
      %117 = vector.broadcast %cst_28 : f32 to vector<1x1xf32>
      %118 = arith.maximumf %109, %117 : vector<1x1xf32>
      %119 = math.rsqrt %118 : vector<1x1xf32>
      %cst_29 = arith.constant -2.500000e-01 : f32
      %120 = vector.broadcast %cst_29 : f32 to vector<1x1xf32>
      %121 = arith.mulf %119, %120 : vector<1x1xf32>
      %122 = vector.broadcast %121 : vector<1x1xf32> to vector<8x1xf32>
      %123 = arith.mulf %116, %122 : vector<8x1xf32>
      %cst_30 = arith.constant 0.899999976 : f32
      %124 = vector.broadcast %cst_30 : f32 to vector<8x1xf32>
      %125 = arith.mulf %124, %arg7 : vector<8x1xf32>
      %cst_31 = arith.constant 1.000000e-01 : f32
      %126 = vector.broadcast %cst_31 : f32 to vector<8x1xf32>
      %127 = arith.mulf %126, %123 : vector<8x1xf32>
      %128 = arith.addf %125, %127 : vector<8x1xf32>
      %cst_32 = arith.constant 9.990000e-01 : f32
      %129 = vector.broadcast %cst_32 : f32 to vector<8x1xf32>
      %130 = arith.mulf %129, %arg8 : vector<8x1xf32>
      %131 = arith.mulf %123, %123 : vector<8x1xf32>
      %cst_33 = arith.constant 1.000000e-03 : f32
      %132 = vector.broadcast %cst_33 : f32 to vector<8x1xf32>
      %133 = arith.mulf %132, %131 : vector<8x1xf32>
      %134 = arith.addf %130, %133 : vector<8x1xf32>
      %cst_34 = arith.constant 0.899999976 : f32
      %135 = vector.broadcast %cst_34 : f32 to vector<1x1xf32>
      %136 = arith.mulf %arg9, %135 : vector<1x1xf32>
      %cst_35 = arith.constant 9.990000e-01 : f32
      %137 = vector.broadcast %cst_35 : f32 to vector<1x1xf32>
      %138 = arith.mulf %arg10, %137 : vector<1x1xf32>
      %cst_36 = arith.constant 1.000000e+00 : f32
      %139 = vector.broadcast %cst_36 : f32 to vector<1x1xf32>
      %140 = arith.subf %139, %136 : vector<1x1xf32>
      %141 = vector.broadcast %140 : vector<1x1xf32> to vector<8x1xf32>
      %142 = arith.divf %128, %141 : vector<8x1xf32>
      %cst_37 = arith.constant 1.000000e+00 : f32
      %143 = vector.broadcast %cst_37 : f32 to vector<1x1xf32>
      %144 = arith.subf %143, %138 : vector<1x1xf32>
      %145 = vector.broadcast %144 : vector<1x1xf32> to vector<8x1xf32>
      %146 = arith.divf %134, %145 : vector<8x1xf32>
      %cst_38 = arith.constant 0.00999999977 : f32
      %147 = vector.broadcast %cst_38 : f32 to vector<8x1xf32>
      %148 = arith.mulf %147, %142 : vector<8x1xf32>
      %149 = math.sqrt %146 : vector<8x1xf32>
      %cst_39 = arith.constant 9.99999993E-9 : f32
      %150 = vector.broadcast %cst_39 : f32 to vector<8x1xf32>
      %151 = arith.addf %149, %150 : vector<8x1xf32>
      %152 = arith.divf %148, %151 : vector<8x1xf32>
      %153 = arith.subf %arg6, %152 : vector<8x1xf32>
      %154 = arith.mulf %153, %153 : vector<8x1xf32>
      %cst_40 = arith.constant dense<0.000000e+00> : vector<1xf32>
      %155 = vector.multi_reduction <add>, %154, %cst_40 [0] : vector<8x1xf32> to vector<1xf32>
      %156 = vector.shape_cast %155 : vector<1xf32> to vector<1x1xf32>
      %157 = math.rsqrt %156 : vector<1x1xf32>
      %158 = vector.broadcast %157 : vector<1x1xf32> to vector<8x1xf32>
      %159 = arith.mulf %153, %158 : vector<8x1xf32>
      scf.yield %159, %128, %134, %136, %138 : vector<8x1xf32>, vector<8x1xf32>, vector<8x1xf32>, vector<1x1xf32>, vector<1x1xf32>
    }
    %8 = tpu.iota {dimensions = array<i32: 1>} : vector<128x128xi32>
    %9 = tpu.iota {dimensions = array<i32: 0>} : vector<128x128xi32>
    %10 = arith.cmpi slt, %8, %9 : vector<128x128xi32>
    %cst_6 = arith.constant dense<0.000000e+00> : vector<1x256xf32>
    %11 = tpu.matmul %7#0, %1, %cst_6 {dimension_numbers = #tpu.dot_dimension_numbers<[0], [0], [1], [1], [0, 1, 1, 1], [], []>} : vector<8x1xf32>, vector<8x256xf32>, vector<1x256xf32> -> vector<1x256xf32>
    %12 = vector.extract_strided_slice %11 {offsets = [0, 0], sizes = [1, 128], strides = [1, 1]} : vector<1x256xf32> to vector<1x128xf32>
    %13 = vector.shape_cast %12 : vector<1x128xf32> to vector<1x128xf32>
    %14 = vector.broadcast %13 : vector<1x128xf32> to vector<128x128xf32>
    %15 = tpu.transpose %14, [1, 0] : vector<128x128xf32> -> vector<128x128xf32>
    %16 = arith.cmpf olt, %14, %15 : vector<128x128xf32>
    %17 = arith.cmpf oeq, %14, %15 : vector<128x128xf32>
    %18 = arith.andi %17, %10 : vector<128x128xi1>
    %19 = arith.ori %16, %18 : vector<128x128xi1>
    %20 = arith.extui %19 : vector<128x128xi1> to vector<128x128xi32>
    %cst_7 = arith.constant dense<0> : vector<128xi32>
    %21 = vector.multi_reduction <add>, %20, %cst_7 [1] : vector<128x128xi32> to vector<128xi32>
    %22 = vector.shape_cast %21 : vector<128xi32> to vector<128x1xi32>
    %23 = vector.broadcast %22 : vector<128x1xi32> to vector<128x128xi32>
    %24 = arith.cmpi eq, %23, %8 : vector<128x128xi32>
    %25 = arith.extui %24 : vector<128x128xi1> to vector<128x128xi32>
    %26 = arith.sitofp %25 : vector<128x128xi32> to vector<128x128xf32>
    %27 = arith.mulf %26, %15 : vector<128x128xf32>
    %cst_8 = arith.constant dense<0.000000e+00> : vector<128xf32>
    %28 = vector.multi_reduction <add>, %27, %cst_8 [0] : vector<128x128xf32> to vector<128xf32>
    %29 = vector.shape_cast %28 : vector<128xf32> to vector<1x128xf32>
    %30 = vector.extract_strided_slice %11 {offsets = [0, 128], sizes = [1, 128], strides = [1, 1]} : vector<1x256xf32> to vector<1x128xf32>
    %31 = vector.shape_cast %30 : vector<1x128xf32> to vector<1x128xf32>
    %32 = vector.broadcast %31 : vector<1x128xf32> to vector<128x128xf32>
    %33 = tpu.transpose %32, [1, 0] : vector<128x128xf32> -> vector<128x128xf32>
    %34 = arith.cmpf olt, %32, %33 : vector<128x128xf32>
    %35 = arith.cmpf oeq, %32, %33 : vector<128x128xf32>
    %36 = arith.andi %35, %10 : vector<128x128xi1>
    %37 = arith.ori %34, %36 : vector<128x128xi1>
    %38 = arith.extui %37 : vector<128x128xi1> to vector<128x128xi32>
    %cst_9 = arith.constant dense<0> : vector<128xi32>
    %39 = vector.multi_reduction <add>, %38, %cst_9 [1] : vector<128x128xi32> to vector<128xi32>
    %40 = vector.shape_cast %39 : vector<128xi32> to vector<128x1xi32>
    %41 = vector.broadcast %40 : vector<128x1xi32> to vector<128x128xi32>
    %42 = arith.cmpi eq, %41, %8 : vector<128x128xi32>
    %43 = arith.extui %42 : vector<128x128xi1> to vector<128x128xi32>
    %44 = arith.sitofp %43 : vector<128x128xi32> to vector<128x128xf32>
    %45 = arith.mulf %44, %33 : vector<128x128xf32>
    %cst_10 = arith.constant dense<0.000000e+00> : vector<128xf32>
    %46 = vector.multi_reduction <add>, %45, %cst_10 [0] : vector<128x128xf32> to vector<128xf32>
    %47 = vector.shape_cast %46 : vector<128xf32> to vector<1x128xf32>
    %48 = arith.subf %29, %47 : vector<1x128xf32>
    %49 = arith.mulf %48, %48 : vector<1x128xf32>
    %cst_11 = arith.constant dense<0.000000e+00> : vector<1xf32>
    %50 = vector.multi_reduction <add>, %49, %cst_11 [1] : vector<1x128xf32> to vector<1xf32>
    %51 = vector.shape_cast %50 : vector<1xf32> to vector<1x1xf32>
    %52 = vector.shape_cast %51 : vector<1x1xf32> to vector<1x1xf32>
    %53 = vector.broadcast %52 : vector<1x1xf32> to vector<1x128xf32>
    %c0_12 = arith.constant 0 : index
    %c0_13 = arith.constant 0 : index
    %c0_14 = arith.constant 0 : index
    %54 = vector.load %arg3[%c0_12, %c0_13, %c0_14] : memref<1x1x128xf32, #tpu.memory_space<vmem>>, vector<1x1x128xf32>
    %55 = vector.shape_cast %54 : vector<1x1x128xf32> to vector<1x128xf32>
    %56 = vector.shape_cast %53 : vector<1x128xf32> to vector<1x1x128xf32>
    tpu.vector_store %arg3[%c0_12, %c0_13, %c0_14], %56 {strides = array<i32>} : memref<1x1x128xf32, #tpu.memory_space<vmem>>, vector<1x1x128xf32>,
    %57 = vector.shape_cast %7#0 : vector<8x1xf32> to vector<8x1xf32>
    %58 = vector.broadcast %57 : vector<8x1xf32> to vector<8x128xf32>
    %c0_15 = arith.constant 0 : index
    %c0_16 = arith.constant 0 : index
    %c0_17 = arith.constant 0 : index
    %59 = vector.load %arg4[%c0_15, %c0_16, %c0_17] : memref<1x8x128xf32, #tpu.memory_space<vmem>>, vector<1x8x128xf32>
    %60 = vector.shape_cast %59 : vector<1x8x128xf32> to vector<8x128xf32>
    %61 = vector.shape_cast %58 : vector<8x128xf32> to vector<1x8x128xf32>
    tpu.vector_store %arg4[%c0_15, %c0_16, %c0_17], %61 {strides = array<i32>} : memref<1x8x128xf32, #tpu.memory_space<vmem>>, vector<1x8x128xf32>,
    return
  }
  func.func @transform_0(%arg0: i32) -> (i32, i32, i32) {
    %c0_i32 = arith.constant 0 : i32
    %c0_i32_0 = arith.constant 0 : i32
    %c0_i32_1 = arith.constant 0 : i32
    return %arg0, %c0_i32, %c0_i32_0 : i32, i32, i32
  }
  func.func @transform_1(%arg0: i32) -> (i32, i32, i32) {
    %c0_i32 = arith.constant 0 : i32
    %c0_i32_0 = arith.constant 0 : i32
    %c0_i32_1 = arith.constant 0 : i32
    return %arg0, %c0_i32, %c0_i32_0 : i32, i32, i32
  }
  func.func @transform_2(%arg0: i32) -> (i32, i32, i32) {
    %c0_i32 = arith.constant 0 : i32
    %c0_i32_0 = arith.constant 0 : i32
    %c0_i32_1 = arith.constant 0 : i32
    return %arg0, %c0_i32, %c0_i32_0 : i32, i32, i32
  }
  func.func @transform_3(%arg0: i32) -> (i32, i32, i32) {
    %c0_i32 = arith.constant 0 : i32
    %c0_i32_0 = arith.constant 0 : i32
    %c0_i32_1 = arith.constant 0 : i32
    return %arg0, %c0_i32, %c0_i32_0 : i32, i32, i32
  }
}

</mosaic_0001>

<bundles_post_ra>
// kernel: _maxsw_pallas.1
= control target key start
LH: loop header
LB: loop body
LE: loop exit
PB: predicated region body
PF: predicated region fallthrough
CT: control target
= control target key end

     0   :  { %s2798_s12 = smov 0   ;;  %s4314_s0 = inlined_call_operand.vmem [shape: f32[2,8,256], index: 0, kind: input, shape index: {}]   ;;  %s4315_s1 = inlined_call_operand.vmem [shape: f32[2,8,1], index: 1, kind: input, shape index: {}]   ;;  %s4316_s2 = inlined_call_operand.vmem [shape: f32[2,1,128], index: 2, kind: output, shape index: {0}]   ;;  %s4317_s3 = inlined_call_operand.vmem [shape: f32[2,8,128], index: 3, kind: output, shape index: {1}]  }
   0x1 LB: > { %s2377_s13 = sadd.s32 4294967295, %s2745_s12   ;;  %p2381_p0 = scmp.ge.s32.totalorder %s2745_s12, 1  ;;  %s2745_s12 = sphi %s2798_s12, %s14_s12  }
   0x2   : > { %p149_p1 = scmp.lt.s32.totalorder %s2745_s12, 3 }
   0x4   : > { %p150_p2 = pnand %p2381_p0, %p149_p1 }
   0x6   : > { %153 = sbr.rel (%p150_p2) target bundleno = 2146 (0x862), region = 28 }
   0xd   : > { %p179_p3 = scmp.lt.s32.totalorder %s2377_s13, 1  ;;  %v2829_v3 = vmov 1.0   ;;  %v2831_v4 = vmov 1.0   ;;  %v2833_v5 = vmov 0.0   ;;  %v2835_v6 = vmov 0.0   ;;  %s2839_s28 = smov 0  }
   0xf   : > { %s4452_s13 = smov (!%p179_p3, %s2377_s13), 1 }
  0x10   : > { %s2486_s14 = sshll.u32 %s4452_s13, 4  ;;  %s2384_s15 = sshll.u32 %s4452_s13, 3 }
  0x11   : > { %s183_s18 = scalar_lea.vmem %s4314_s0, %s2486_s14  ;;  %s187_s21 = scalar_lea.vmem %s4315_s1, %s2384_s15 }
  0x12   : > { %s190_s24 = scalar_lea.vmem %s4316_s2, %s4452_s13  ;;  %s2823_s27 = scalar_lea.vmem %s4317_s3, %s2384_s15  ;;  %v2825_v0 = vld [vmem:[%s183_s18] sm:$0xff]  ;;  %v2827_v1 = vld [vmem:[%s183_s18 + $0x8] sm:$0xff] }
  0x13   : > { %v197_v2 = vld [vmem:[%s187_s21] sm:$0xff]  }
  0x14 LB: >> { %280 = vmatprep.subr.mxu0 %v2827_v1  ;;  %v4325_v7 = vmov 0.0   ;;  %244 = vxpose.xlu0.b32.start.end [1/1] (short) (narrow) %v2765_v2, 8  ;;  %vm276_vm0 = vcmask 64512   ;;  %v209_v9 = vlaneseq  ;;  %v4329_v21 = vmov 0   ;;  %s203_s28 = sadd.s32 1, %s2769_s28   ;;  %s2769_s28 = sphi %s2839_s28, %s203_s28   ;;  %v2765_v2 = vphi %v197_v2, %v4403_v2   ;;  %v2761_v6 = vphi %v2835_v6, %v1292_v6   ;;  %v2757_v5 = vphi %v2833_v5, %v1296_v5   ;;  %v2753_v4 = vphi %v2831_v4, %v1297_v4   ;;  %v2749_v3 = vphi %v2829_v3, %v1298_v3  }
  0x15   : >> { %281 = vmatpush1.msra.mxu0 %v2825_v0  ;;  %344 = vmatprep.mubr.f32.mxu0 %v4325_v7  ;;  %v1298_v3 = vmul.f32 0.999, %v2749_v3   ;;  %v1297_v4 = vmul.f32 0.9, %v2753_v4   ;;  %p200_p4 = scmp.ge.s32.totalorder %s203_s28, 5  }
  0x16   : >> { %v2864_v10 = vshrl.u32 %v209_v9, 7  ;;  %v2907_v16 = vand.u32 127, %v209_v9 }
  0x18   : >> { %v2867_v11 = vsub.s32 0, %v2864_v10  ;;  %vm228_vm1 = vcmp.lt.s32.totalorder %v2907_v16, %v2864_v10  ;;  %v2912_v17 = vadd.s32 8, %v2864_v10  ;;  %v2949_v25 = vadd.s32 16, %v2864_v10 }
  0x19   : >> { %v2957_v27 = vadd.s32 24, %v2864_v10  ;;  %v3007_v50 = vadd.s32 40, %v2864_v10  ;;  %v3022_v56 = vadd.s32 32, %v2864_v10 }
  0x1a   : >> { %vm229_vm7 = vcmp.lt.s32.totalorder %v2907_v16, %v2912_v17  ;;  %4370 = vst [vmem:[#allocation2_spill] sm:$0xff] %v2949_v25 }
  0x1b   : >> { %4371 = vst [vmem:[#allocation3_spill] sm:$0xff] %v2957_v27  ;;  %4374 = vst [vmem:[#allocation4_spill] sm:$0xff] %v3007_v50 }
  0x1c   : >> { %4377 = vst [vmem:[#allocation5_spill] sm:$0xff] %v3022_v56 }
  0x94   : >> { %v260_v8 = vpop.trf.xlu0 }
  0x95   : >> { %2386 = vmatmul.mubr.msk.f32.vlgmr.msra.gmra.mrb[0].mxu0 %vm276_vm0, %v260_v8 }
 0x168   : >> { %v346_v12 = vpop.f32.mrb[0].mxu0 }
 0x169   : >> { %v2870_v13 = vrot.slane %v346_v12, %v2867_v11  ;;  %v348_v14 = vpop.f32.mrb[1].mxu0 }
 0x16a   : >> { %v2873_v15 = vrot.slane %v348_v14, %v2867_v11 }
 0x16b   : >> { %355 = vxpose.xlu0.b32.start [1/16] %v2870_v13, 128 }
 0x16c   : >> { %818 = vxpose.xlu1.b32.start [1/16] %v2873_v15, 128 }
 0x16f   : >> { %356 = vxpose.xlu0.b32.cont [2/16] %v2870_v13, 128 }
 0x170   : >> { %819 = vxpose.xlu1.b32.cont [2/16] %v2873_v15, 128 }
 0x173   : >> { %357 = vxpose.xlu0.b32.cont [3/16] %v2870_v13, 128 }
 0x174   : >> { %820 = vxpose.xlu1.b32.cont [3/16] %v2873_v15, 128 }
 0x177   : >> { %358 = vxpose.xlu0.b32.cont [4/16] %v2870_v13, 128 }
 0x178   : >> { %821 = vxpose.xlu1.b32.cont [4/16] %v2873_v15, 128 }
 0x17b   : >> { %359 = vxpose.xlu0.b32.cont [5/16] %v2870_v13, 128 }
 0x17c   : >> { %822 = vxpose.xlu1.b32.cont [5/16] %v2873_v15, 128 }
 0x17f   : >> { %360 = vxpose.xlu0.b32.cont [6/16] %v2870_v13, 128 }
 0x180   : >> { %823 = vxpose.xlu1.b32.cont [6/16] %v2873_v15, 128 }
 0x183   : >> { %361 = vxpose.xlu0.b32.cont [7/16] %v2870_v13, 128 }
 0x184   : >> { %824 = vxpose.xlu1.b32.cont [7/16] %v2873_v15, 128 }
 0x187   : >> { %362 = vxpose.xlu0.b32.cont [8/16] %v2870_v13, 128 }
 0x188   : >> { %825 = vxpose.xlu1.b32.cont [8/16] %v2873_v15, 128 }
 0x18b   : >> { %363 = vxpose.xlu0.b32.cont [9/16] %v2870_v13, 128 }
 0x18c   : >> { %826 = vxpose.xlu1.b32.cont [9/16] %v2873_v15, 128 }
 0x18f   : >> { %364 = vxpose.xlu0.b32.cont [10/16] %v2870_v13, 128 }
 0x190   : >> { %827 = vxpose.xlu1.b32.cont [10/16] %v2873_v15, 128 }
 0x193   : >> { %365 = vxpose.xlu0.b32.cont [11/16] %v2870_v13, 128 }
 0x194   : >> { %828 = vxpose.xlu1.b32.cont [11/16] %v2873_v15, 128 }
 0x197   : >> { %366 = vxpose.xlu0.b32.cont [12/16] %v2870_v13, 128 }
 0x198   : >> { %829 = vxpose.xlu1.b32.cont [12/16] %v2873_v15, 128 }
 0x19b   : >> { %367 = vxpose.xlu0.b32.cont [13/16] %v2870_v13, 128 }
 0x19c   : >> { %830 = vxpose.xlu1.b32.cont [13/16] %v2873_v15, 128 }
 0x19f   : >> { %368 = vxpose.xlu0.b32.cont [14/16] %v2870_v13, 128 }
 0x1a0   : >> { %831 = vxpose.xlu1.b32.cont [14/16] %v2873_v15, 128 }
 0x1a3   : >> { %369 = vxpose.xlu0.b32.cont [15/16] %v2870_v13, 128 }
 0x1a4   : >> { %832 = vxpose.xlu1.b32.cont [15/16] %v2873_v15, 128 }
 0x1a7   : >> { %370 = vxpose.xlu0.b32.end [16/16] %v2870_v13, 128 }
 0x1a8   : >> { %833 = vxpose.xlu1.b32.end [16/16] %v2873_v15, 128 }
 0x1eb   : >> { %v2914_v18 = vpop.trf.xlu0 }
 0x1ec   : >> { %vm387_vm2 = vcmp.lt.f32.partialorder %v2870_v13, %v2914_v18  ;;  %vm403_vm3 = vcmp.eq.f32.partialorder %v2870_v13, %v2914_v18  ;;  %v2920_v19 = vpop.trf.xlu1 }
 0x1ed   : >> { %vm419_vm4 = vmand %vm403_vm3, %vm228_vm1  ;;  %vm866_vm5 = vcmp.eq.f32.partialorder %v2873_v15, %v2920_v19  ;;  %vm850_vm6 = vcmp.lt.f32.partialorder %v2873_v15, %v2920_v19 }
 0x1ee   : >> { %vm435_vm8 = vmor %vm387_vm2, %vm419_vm4  ;;  %vm4365_vm4 = vcmp.lt.s32.totalorder %v2907_v16, %v2949_v25 }
 0x1ef   : >> { %v2931_v20 = vpop.trf.xlu0  ;;  %v451_v22 = vsel %vm435_vm8, 1, %v4329_v21  ;;  %vm882_vm9 = vmand %vm866_vm5, %vm228_vm1  ;;  %vm4364_vm8 = vcmp.lt.s32.totalorder %v2907_v16, %v2957_v27 }
 0x1f0   : >> { %vm388_vm10 = vcmp.lt.f32.partialorder %v2870_v13, %v2931_v20  ;;  %vm404_vm11 = vcmp.eq.f32.partialorder %v2870_v13, %v2931_v20  ;;  %v2941_v23 = vpop.trf.xlu1  ;;  %v468_v24 = vshrl.u32 %v451_v22, 16  ;;  %vm898_vm12 = vmor %vm850_vm6, %vm882_vm9  ;;  %v467_v28 = vand.u32 65535, %v451_v22 }
 0x1f1   : >> { %vm420_vm13 = vmand %vm404_vm11, %vm229_vm7  ;;  %vm867_vm14 = vcmp.eq.f32.partialorder %v2873_v15, %v2941_v23  ;;  %vm851_vm15 = vcmp.lt.f32.partialorder %v2873_v15, %v2941_v23  ;;  %v914_v30 = vsel %vm898_vm12, 1, %v4329_v21 }
 0x1f2   : >> { %vm883_vm2 = vmand %vm867_vm14, %vm229_vm7  ;;  %v470_v26 = vcvt.s32.f32 %v468_v24  ;;  %v469_v34 = vcvt.s32.f32 %v467_v28  ;;  %v931_v35 = vshrl.u32 %v914_v30, 16  ;;  %v930_v43 = vand.u32 65535, %v914_v30 }
 0x1f3   : >> { %v2959_v29 = vpop.trf.xlu0  ;;  %vm436_vm3 = vmor %vm388_vm10, %vm420_vm13 }
 0x1f4   : >> { %473 = vadd.xlane.f32.xlu1 %v470_v26  ;;  %v2962_v31 = vpop.trf.xlu1  ;;  %v452_v32 = vsel %vm436_vm3, 1, %v4329_v21  ;;  %vm405_vm5 = vcmp.eq.f32.partialorder %v2870_v13, %v2959_v29  ;;  %vm899_vm6 = vmor %vm851_vm15, %vm883_vm2  ;;  %vm389_vm12 = vcmp.lt.f32.partialorder %v2870_v13, %v2959_v29  ;;  %v933_v42 = vcvt.s32.f32 %v931_v35 }
 0x1f5   : >> { %v480_v33 = vshrl.u32 %v452_v32, 16  ;;  %v479_v38 = vand.u32 65535, %v452_v32  ;;  %vm2976_vm9 = vmand %vm405_vm5, %vm4365_vm4  ;;  %v915_v41 = vsel %vm899_vm6, 1, %v4329_v21  ;;  %vm868_vm3 = vcmp.eq.f32.partialorder %v2873_v15, %v2962_v31 }
 0x1f6   : >> { %v942_v46 = vand.u32 65535, %v915_v41  ;;  %vm437_vm2 = vmor %vm389_vm12, %vm2976_vm9  ;;  %v932_v48 = vcvt.s32.f32 %v930_v43  ;;  %v943_v49 = vshrl.u32 %v915_v41, 16  ;;  %vm4318_vm12 = vcmp.lt.s32.totalorder %v2907_v16, %v3007_v50 }
 0x1f7   : >> { %v2971_v36 = vpop.trf.xlu0  ;;  %v482_v37 = vcvt.s32.f32 %v480_v33  ;;  %v481_v45 = vcvt.s32.f32 %v479_v38  ;;  %v453_v53 = vsel %vm437_vm2, 1, %v4329_v21  ;;  %vm3013_vm9 = vmand %vm868_vm3, %vm4365_vm4 }
 0x1f8   : >> { %vm390_vm10 = vcmp.lt.f32.partialorder %v2870_v13, %v2971_v36  ;;  %vm406_vm11 = vcmp.eq.f32.partialorder %v2870_v13, %v2971_v36  ;;  %471 = vadd.xlane.f32.xlu1 %v469_v34  ;;  %v2984_v40 = vpop.trf.xlu1  ;;  %v944_v51 = vcvt.s32.f32 %v942_v46  ;;  %v945_v58 = vcvt.s32.f32 %v943_v49 }
 0x1f9   : >> { %vm422_vm13 = vmand %vm406_vm11, %vm4364_vm8  ;;  %485 = vadd.xlane.f32.xlu0 %v482_v37  ;;  %vm869_vm14 = vcmp.eq.f32.partialorder %v2873_v15, %v2984_v40  ;;  %vm853_vm5 = vcmp.lt.f32.partialorder %v2873_v15, %v2984_v40  ;;  %v492_v59 = vshrl.u32 %v453_v53, 16  ;;  %v491_v8 = vand.u32 65535, %v453_v53 }
 0x1fa   : >> { %vm438_vm15 = vmor %vm390_vm10, %vm422_vm13  ;;  %vm852_vm10 = vcmp.lt.f32.partialorder %v2873_v15, %v2962_v31  ;;  %v3063_v37 = vadd.s32 56, %v2864_v10 }
 0x1fb   : >> { %v2994_v44 = vpop.trf.xlu0  ;;  %v454_v47 = vsel %vm438_vm15, 1, %v4329_v21  ;;  %vm885_vm6 = vmand %vm869_vm14, %vm4364_vm8  ;;  %vm4347_vm15 = vcmp.lt.s32.totalorder %v2907_v16, %v3022_v56  ;;  %v494_v63 = vcvt.s32.f32 %v492_v59  ;;  %v493_v26 = vcvt.s32.f32 %v491_v8 }
 0x1fc   : >> { %936 = vadd.xlane.f32.xlu1 %v933_v42  ;;  %v504_v52 = vshrl.u32 %v454_v47, 16  ;;  %vm901_vm11 = vmor %vm853_vm5, %vm885_vm6  ;;  %v3024_v57 = vpop.trf.xlu1  ;;  %v503_v61 = vand.u32 65535, %v454_v47  ;;  %vm407_vm2 = vcmp.eq.f32.partialorder %v2870_v13, %v2994_v44  ;;  %4378 = vst [vmem:[#allocation6_spill] sm:$0xff] %v3063_v37 }
 0x1fd   : >> { %483 = vadd.xlane.f32.xlu0 %v481_v45  ;;  %v917_v62 = vsel %vm901_vm11, 1, %v4329_v21  ;;  %vm900_vm14 = vmor %vm852_vm10, %vm3013_vm9  ;;  %vm391_vm9 = vcmp.lt.f32.partialorder %v2870_v13, %v2994_v44  ;;  %v3078_v45 = vadd.s32 48, %v2864_v10 }
 0x1fe   : >> { %v506_v60 = vcvt.s32.f32 %v504_v52  ;;  %v505_v9 = vcvt.s32.f32 %v503_v61  ;;  %v967_v12 = vshrl.u32 %v917_v62, 16  ;;  %v916_v14 = vsel %vm900_vm14, 1, %v4329_v21  ;;  %vm423_vm6 = vmand %vm407_vm2, %vm4347_vm15 }
 0x1ff   : >> { %v3017_v55 = vpop.trf.xlu0  ;;  %v955_v28 = vshrl.u32 %v916_v14, 16  ;;  %v966_v32 = vand.u32 65535, %v917_v62  ;;  %vm870_vm14 = vcmp.eq.f32.partialorder %v2873_v15, %v3024_v57  ;;  %v954_v35 = vand.u32 65535, %v916_v14  ;;  %4381 = vst [vmem:[#allocation7_spill] sm:$0xff] %v3078_v45 }
 0x200   : >> { %934 = vadd.xlane.f32.xlu1 %v932_v48  ;;  %vm408_vm13 = vcmp.eq.f32.partialorder %v2870_v13, %v3017_v55  ;;  %vm392_vm3 = vcmp.lt.f32.partialorder %v2870_v13, %v3017_v55  ;;  %v3046_v22 = vpop.trf.xlu1  ;;  %v969_v30 = vcvt.s32.f32 %v967_v12  ;;  %v4323_v52 = vmov 0.0|0.0  }
 0x201   : >> { %946 = vadd.xlane.f32.xlu0 %v944_v51  ;;  %vm424_vm5 = vmand %vm408_vm13, %vm4318_vm12  ;;  %vm871_vm11 = vcmp.eq.f32.partialorder %v2873_v15, %v3046_v22  ;;  %vm855_vm2 = vcmp.lt.f32.partialorder %v2873_v15, %v3046_v22  ;;  %v957_v34 = vcvt.s32.f32 %v955_v28  ;;  %v968_v38 = vcvt.s32.f32 %v966_v32  ;;  %2591 = vmatprep.subr.bf16.mxu1 %v4323_v52 }
 0x202   : >> { %vm440_vm10 = vmor %vm392_vm3, %vm424_vm5  ;;  %v956_v47 = vcvt.s32.f32 %v954_v35  ;;  %2615 = vmatprep.subr.bf16.mxu0 %v4323_v52  ;;  %v3124_v32 = vadd.s32 72, %v2864_v10 }
 0x203   : >> { %v3050_v24 = vpop.trf.xlu0  ;;  %v456_v33 = vsel %vm440_vm10, 1, %v4329_v21  ;;  %vm439_vm13 = vmor %vm391_vm9, %vm423_vm6  ;;  %vm854_vm6 = vcmp.lt.f32.partialorder %v2873_v15, %v3024_v57  ;;  %vm4319_vm10 = vcmp.lt.s32.totalorder %v2907_v16, %v3063_v37 }
 0x204   : >> { %948 = vadd.xlane.f32.xlu1 %v945_v58  ;;  %vm887_vm3 = vmand %vm871_vm11, %vm4318_vm12  ;;  %v528_v39 = vshrl.u32 %v456_v33, 16  ;;  %v455_v41 = vsel %vm439_vm13, 1, %v4329_v21  ;;  %v3080_v46 = vpop.trf.xlu1  ;;  %v527_v51 = vand.u32 65535, %v456_v33  ;;  %4382 = vst [vmem:[#allocation8_spill] sm:$0xff] %v3124_v32 }
 0x205   : >> { %509 = vadd.xlane.f32.xlu0 %v506_v60  ;;  %vm3069_vm5 = vmand %vm870_vm14, %vm4347_vm15  ;;  %v516_v48 = vshrl.u32 %v455_v41, 16  ;;  %vm4320_vm14 = vcmp.lt.s32.totalorder %v2907_v16, %v3078_v45  ;;  %v515_v58 = vand.u32 65535, %v455_v41  ;;  %v3139_v41 = vadd.s32 64, %v2864_v10 }
 0x206   : >> { %vm903_vm9 = vmor %vm855_vm2, %vm887_vm3  ;;  %v530_v49 = vcvt.s32.f32 %v528_v39  ;;  %vm409_vm2 = vcmp.eq.f32.partialorder %v2870_v13, %v3050_v24  ;;  %v529_v59 = vcvt.s32.f32 %v527_v51 }
 0x207   : >> { %v3073_v43 = vpop.trf.xlu0  ;;  %v919_v53 = vsel %vm903_vm9, 1, %v4329_v21  ;;  %vm902_vm13 = vmor %vm854_vm6, %vm3069_vm5  ;;  %v518_v54 = vcvt.s32.f32 %v516_v48  ;;  %vm393_vm6 = vcmp.lt.f32.partialorder %v2870_v13, %v3050_v24  ;;  %v517_v8 = vcvt.s32.f32 %v515_v58  ;;  %4385 = vst [vmem:[#allocation9_spill] sm:$0xff] %v3139_v41 }
 0x208   : >> { %497 = vadd.xlane.f32.xlu1 %v494_v63  ;;  %vm410_vm11 = vcmp.eq.f32.partialorder %v2870_v13, %v3073_v43  ;;  %vm394_vm3 = vcmp.lt.f32.partialorder %v2870_v13, %v3073_v43  ;;  %v991_v60 = vshrl.u32 %v919_v53, 16  ;;  %v918_v61 = vsel %vm902_vm13, 1, %v4329_v21  ;;  %vm425_vm5 = vmand %vm409_vm2, %vm4320_vm14  ;;  %v3107_v62 = vpop.trf.xlu1 }
 0x209   : >> { %507 = vadd.xlane.f32.xlu0 %v505_v9  ;;  %vm426_vm9 = vmand %vm410_vm11, %vm4319_vm10  ;;  %v979_v9 = vshrl.u32 %v918_v61, 16  ;;  %vm873_vm11 = vcmp.eq.f32.partialorder %v2873_v15, %v3107_v62  ;;  %v990_v14 = vand.u32 65535, %v919_v53  ;;  %vm872_vm2 = vcmp.eq.f32.partialorder %v2873_v15, %v3080_v46 }
 0x20a   : >> { %vm442_vm12 = vmor %vm394_vm3, %vm426_vm9  ;;  %v993_v12 = vcvt.s32.f32 %v991_v60  ;;  %vm857_vm3 = vcmp.lt.f32.partialorder %v2873_v15, %v3107_v62 }
 0x20b   : >> { %v3111_v63 = vpop.trf.xlu0  ;;  %vm441_vm13 = vmor %vm393_vm6, %vm425_vm5  ;;  %v981_v28 = vcvt.s32.f32 %v979_v9  ;;  %v992_v33 = vcvt.s32.f32 %v990_v14  ;;  %vm856_vm5 = vcmp.lt.f32.partialorder %v2873_v15, %v3080_v46 }
 0x20c   : >> { %495 = vadd.xlane.f32.xlu1 %v493_v26  ;;  %v458_v26 = vsel %vm442_vm12, 1, %v4329_v21  ;;  %vm889_vm9 = vmand %vm873_vm11, %vm4319_vm10  ;;  %v457_v35 = vsel %vm441_vm13, 1, %v4329_v21  ;;  %v3141_v42 = vpop.trf.xlu1  ;;  %vm4321_vm11 = vcmp.lt.s32.totalorder %v2907_v16, %v3124_v32 }
 0x20d   : >> { %972 = vadd.xlane.f32.xlu0 %v969_v30  ;;  %v978_v30 = vand.u32 65535, %v918_v61  ;;  %vm3130_vm12 = vmand %vm872_vm2, %vm4320_vm14  ;;  %v540_v48 = vshrl.u32 %v457_v35, 16  ;;  %v551_v51 = vand.u32 65535, %v458_v26  ;;  %v539_v58 = vand.u32 65535, %v457_v35 }
 0x20e   : >> { %vm905_vm6 = vmor %vm857_vm3, %vm889_vm9  ;;  %vm4322_vm3 = vcmp.lt.s32.totalorder %v2907_v16, %v3139_v41  ;;  %vm411_vm9 = vcmp.eq.f32.partialorder %v2870_v13, %v3111_v63  ;;  %v3180_v35 = vadd.s32 88, %v2864_v10 }
 0x20f   : >> { %v3134_v39 = vpop.trf.xlu0  ;;  %v921_v53 = vsel %vm905_vm6, 1, %v4329_v21  ;;  %vm904_vm2 = vmor %vm856_vm5, %vm3130_vm12  ;;  %vm395_vm5 = vcmp.lt.f32.partialorder %v2870_v13, %v3111_v63 }
 0x210   : >> { %960 = vadd.xlane.f32.xlu1 %v957_v34  ;;  %v552_v34 = vshrl.u32 %v458_v26, 16  ;;  %vm412_vm13 = vcmp.eq.f32.partialorder %v2870_v13, %v3134_v39  ;;  %vm396_vm10 = vcmp.lt.f32.partialorder %v2870_v13, %v3134_v39  ;;  %v1015_v60 = vshrl.u32 %v921_v53, 16  ;;  %vm427_vm12 = vmand %vm411_vm9, %vm4322_vm3  ;;  %4386 = vst [vmem:[#allocation10_spill] sm:$0xff] %v3180_v35 }
 0x211   : >> { %970 = vadd.xlane.f32.xlu0 %v968_v38  ;;  %vm428_vm14 = vmand %vm412_vm13, %vm4321_vm11  ;;  %v920_v61 = vsel %vm904_vm2, 1, %v4329_v21  ;;  %vm874_vm9 = vcmp.eq.f32.partialorder %v2873_v15, %v3141_v42 }
 0x212   : >> { %vm444_vm6 = vmor %vm396_vm10, %vm428_vm14  ;;  %v1003_v14 = vshrl.u32 %v920_v61, 16  ;;  %v1017_v26 = vcvt.s32.f32 %v1015_v60 }
 0x213   : >> { %v3167_v9 = vpop.trf.xlu0  ;;  %vm443_vm2 = vmor %vm395_vm5, %vm427_vm12  ;;  %vm858_vm5 = vcmp.lt.f32.partialorder %v2873_v15, %v3141_v42 }
 0x214   : >> { %958 = vadd.xlane.f32.xlu1 %v956_v47  ;;  %v980_v47 = vcvt.s32.f32 %v978_v30  ;;  %v460_v30 = vsel %vm444_vm6, 1, %v4329_v21  ;;  %vm3186_vm12 = vmand %vm874_vm9, %vm4322_vm3 }
 0x215   : >> { %533 = vadd.xlane.f32.xlu0 %v530_v49  ;;  %v554_v49 = vcvt.s32.f32 %v552_v34  ;;  %v1002_v34 = vand.u32 65535, %v920_v61  ;;  %v575_v61 = vand.u32 65535, %v460_v30  ;;  %vm906_vm9 = vmor %vm858_vm5, %vm3186_vm12  ;;  %vm397_vm5 = vcmp.lt.f32.partialorder %v2870_v13, %v3167_v9 }
 0x218   : >> { %521 = vadd.xlane.f32.xlu1 %v518_v54  ;;  %v542_v54 = vcvt.s32.f32 %v540_v48  ;;  %v459_v48 = vsel %vm443_vm2, 1, %v4329_v21 }
 0x219   : >> { %531 = vadd.xlane.f32.xlu0 %v529_v59  ;;  %v553_v59 = vcvt.s32.f32 %v551_v51  ;;  %v3190_v51 = vpop.trf.xlu0 }
 0x21a   : >> { %vm414_vm2 = vcmp.eq.f32.partialorder %v2870_v13, %v3190_v51 }
 0x21c   : >> { %519 = vadd.xlane.f32.xlu1 %v517_v8  ;;  %v3163_v8 = vpop.trf.xlu1 }
 0x21d   : >> { %996 = vadd.xlane.f32.xlu0 %v993_v12  ;;  %v541_v12 = vcvt.s32.f32 %v539_v58  ;;  %vm875_vm13 = vcmp.eq.f32.partialorder %v2873_v15, %v3163_v8  ;;  %vm859_vm10 = vcmp.lt.f32.partialorder %v2873_v15, %v3163_v8  ;;  %v1004_v58 = vcvt.s32.f32 %v1002_v34 }
 0x21e   : >> { %vm891_vm14 = vmand %vm875_vm13, %vm4321_vm11  ;;  %vm4327_vm13 = vcmp.lt.s32.totalorder %v2907_v16, %v3180_v35  ;;  %vm398_vm11 = vcmp.lt.f32.partialorder %v2870_v13, %v3190_v51  ;;  %v4394_v35 = vmov 0  }
 0x21f   : >> { %vm907_vm6 = vmor %vm859_vm10, %vm891_vm14  ;;  %vm413_vm14 = vcmp.eq.f32.partialorder %v2870_v13, %v3167_v9 }
 0x220   : >> { %984 = vadd.xlane.f32.xlu1 %v981_v28  ;;  %v1014_v28 = vand.u32 65535, %v921_v53  ;;  %v3195_v53 = vadd.s32 80, %v2864_v10  ;;  %vm430_vm3 = vmand %vm414_vm2, %vm4327_vm13 }
 0x221   : >> { %994 = vadd.xlane.f32.xlu0 %v992_v33  ;;  %v1005_v33 = vcvt.s32.f32 %v1003_v14 }
 0x222   : >> { %v1016_v38 = vcvt.s32.f32 %v1014_v28  ;;  %4389 = vst [vmem:[#allocation11_spill] sm:$0xff] %v3195_v53  ;;  %vm4328_vm10 = vcmp.lt.s32.totalorder %v2907_v16, %v3195_v53  ;;  %v577_v28 = vcvt.s32.f32 %v575_v61 }
 0x223   : >> { %vm429_vm12 = vmand %vm413_vm14, %vm4328_vm10 }
 0x224   : >> { %982 = vadd.xlane.f32.xlu1 %v980_v47  ;;  %v576_v47 = vshrl.u32 %v460_v30, 16 }
 0x225   : >> { %557 = vadd.xlane.f32.xlu0 %v554_v49 }
 0x226   : >> { %v578_v60 = vcvt.s32.f32 %v576_v47 }
 0x228   : >> { %545 = vadd.xlane.f32.xlu1 %v542_v54  ;;  %v3197_v54 = vpop.trf.xlu1 }
 0x229   : >> { %555 = vadd.xlane.f32.xlu0 %v553_v59  ;;  %v564_v59 = vshrl.u32 %v459_v48, 16  ;;  %vm876_vm14 = vcmp.eq.f32.partialorder %v2873_v15, %v3197_v54 }
 0x22b   : >> { %v566_v14 = vcvt.s32.f32 %v564_v59 }
 0x22c   : >> { %543 = vadd.xlane.f32.xlu1 %v541_v12  ;;  %v923_v12 = vsel %vm907_vm6, 1, %v4329_v21  ;;  %v3219_v34 = vpop.trf.xlu1  ;;  %vm446_vm6 = vmor %vm398_vm11, %vm430_vm3 }
 0x22d   : >> { %1020 = vadd.xlane.f32.xlu0 %v1017_v26  ;;  %v563_v26 = vand.u32 65535, %v459_v48  ;;  %v1039_v30 = vshrl.u32 %v923_v12, 16  ;;  %vm877_vm2 = vcmp.eq.f32.partialorder %v2873_v15, %v3219_v34  ;;  %v462_v59 = vsel %vm446_vm6, 1, %v4329_v21 }
 0x22e   : >> { %vm861_vm11 = vcmp.lt.f32.partialorder %v2873_v15, %v3219_v34  ;;  %vm893_vm3 = vmand %vm877_vm2, %vm4327_vm13 }
 0x22f   : >> { %v565_v47 = vcvt.s32.f32 %v563_v26  ;;  %v1041_v49 = vcvt.s32.f32 %v1039_v30  ;;  %v600_v26 = vshrl.u32 %v462_v59, 16  ;;  %vm909_vm6 = vmor %vm861_vm11, %vm893_vm3 }
 0x230   : >> { %1008 = vadd.xlane.f32.xlu1 %v1005_v33  ;;  %v922_v33 = vsel %vm906_vm9, 1, %v4329_v21  ;;  %vm445_vm9 = vmor %vm397_vm5, %vm429_vm12  ;;  %vm860_vm5 = vcmp.lt.f32.partialorder %v2873_v15, %v3197_v54  ;;  %v925_v7 = vsel %vm909_vm6, 1, %v4329_v21 }
 0x231   : >> { %1018 = vadd.xlane.f32.xlu0 %v1016_v38  ;;  %v3223_v38 = vpop.trf.xlu0  ;;  %v1027_v48 = vshrl.u32 %v922_v33, 16  ;;  %v1026_v61 = vand.u32 65535, %v922_v33  ;;  %vm3242_vm12 = vmand %vm876_vm14, %vm4328_vm10  ;;  %v3251_v33 = vadd.s32 96, %v2864_v10  ;;  %v602_v52 = vcvt.s32.f32 %v600_v26 }
 0x232   : >> { %vm908_vm14 = vmor %vm860_vm5, %vm3242_vm12  ;;  %vm415_vm3 = vcmp.eq.f32.partialorder %v2870_v13, %v3223_v38  ;;  %v1063_v26 = vshrl.u32 %v925_v7, 16  ;;  %vm399_vm5 = vcmp.lt.f32.partialorder %v2870_v13, %v3223_v38 }
 0x233   : >> { %4393 = vst [vmem:[#allocation13_spill] sm:$0xff] %v3251_v33  ;;  %vm4344_vm11 = vcmp.lt.s32.totalorder %v2907_v16, %v3251_v33  ;;  %v924_v30 = vsel %vm908_vm14, 1, %v4329_v21 }
 0x234   : >> { %1006 = vadd.xlane.f32.xlu1 %v1004_v58  ;;  %v1038_v58 = vand.u32 65535, %v923_v12  ;;  %vm431_vm12 = vmand %vm415_vm3, %vm4344_vm11 }
 0x235   : >> { %581 = vadd.xlane.f32.xlu0 %v578_v60  ;;  %v1029_v60 = vcvt.s32.f32 %v1027_v48  ;;  %v3253_v48 = vpop.trf.xlu1  ;;  %vm447_vm14 = vmor %vm399_vm5, %vm431_vm12 }
 0x236   : >> { %v1040_v12 = vcvt.s32.f32 %v1038_v58  ;;  %vm878_vm3 = vcmp.eq.f32.partialorder %v2873_v15, %v3253_v48  ;;  %vm862_vm5 = vcmp.lt.f32.partialorder %v2873_v15, %v3253_v48 }
 0x237   : >> { %vm3298_vm12 = vmand %vm878_vm3, %vm4344_vm11 }
 0x238   : >> { %569 = vadd.xlane.f32.xlu1 %v566_v14  ;;  %v3236_v14 = vadd.s32 104, %v2864_v10  ;;  %vm910_vm3 = vmor %vm862_vm5, %vm3298_vm12 }
 0x239   : >> { %579 = vadd.xlane.f32.xlu0 %v577_v28  ;;  %v461_v28 = vsel %vm445_vm9, 1, %v4329_v21  ;;  %v1062_v21 = vand.u32 65535, %v925_v7 }
 0x23a   : >> { %4390 = vst [vmem:[#allocation12_spill] sm:$0xff] %v3236_v14  ;;  %v588_v58 = vshrl.u32 %v461_v28, 16  ;;  %vm4343_vm2 = vcmp.lt.s32.totalorder %v2907_v16, %v3236_v14 }
 0x23b   : >> { %v1064_v7 = vcvt.s32.f32 %v1062_v21 }
 0x23c   : >> { %567 = vadd.xlane.f32.xlu1 %v565_v47  ;;  %v3246_v47 = vpop.trf.xlu0 }
 0x23d   : >> { %1044 = vadd.xlane.f32.xlu0 %v1041_v49  ;;  %v1028_v49 = vcvt.s32.f32 %v1026_v61  ;;  %vm416_vm9 = vcmp.eq.f32.partialorder %v2870_v13, %v3246_v47  ;;  %vm400_vm13 = vcmp.lt.f32.partialorder %v2870_v13, %v3246_v47  ;;  %v587_v61 = vand.u32 65535, %v461_v28 }
 0x23e   : >> { %vm432_vm10 = vmand %vm416_vm9, %vm4343_vm2  ;;  %v1051_v28 = vshrl.u32 %v924_v30, 16 }
 0x23f   : >> { %vm448_vm6 = vmor %vm400_vm13, %vm432_vm10 }
 0x240   : >> { %1032 = vadd.xlane.f32.xlu1 %v1029_v60  ;;  %v599_v60 = vand.u32 65535, %v462_v59  ;;  %v590_v59 = vcvt.s32.f32 %v588_v58  ;;  %v589_v58 = vcvt.s32.f32 %v587_v61  ;;  %v464_v53 = vsel %vm448_vm6, 1, %v4394_v35 }
 0x241   : >> { %1042 = vadd.xlane.f32.xlu0 %v1040_v12  ;;  %v1050_v61 = vand.u32 65535, %v924_v30  ;;  %v3307_v30 = vadd.s32 112, %v2864_v10 }
 0x242   : >> { %v601_v12 = vcvt.s32.f32 %v599_v60  ;;  %v1065_v60 = vcvt.s32.f32 %v1063_v26  ;;  %v624_v26 = vshrl.u32 %v464_v53, 16 }
 0x243   : >> { %4398 = vst [vmem:[#allocation15_spill] sm:$0xff] %v3307_v30 }
 0x244   : >> { %1030 = vadd.xlane.f32.xlu1 %v1028_v49  ;;  %v3275_v49 = vpop.trf.xlu1  ;;  %v626_v33 = vcvt.s32.f32 %v624_v26 }
 0x245   : >> { %605 = vadd.xlane.f32.xlu0 %v602_v52  ;;  %v3279_v52 = vpop.trf.xlu0  ;;  %vm879_vm9 = vcmp.eq.f32.partialorder %v2873_v15, %v3275_v49  ;;  %vm863_vm13 = vcmp.lt.f32.partialorder %v2873_v15, %v3275_v49 }
 0x246   : >> { %vm895_vm10 = vmand %vm879_vm9, %vm4343_vm2  ;;  %vm401_vm5 = vcmp.lt.f32.partialorder %v2870_v13, %v3279_v52 }
 0x247   : >> { %vm911_vm6 = vmor %vm863_vm13, %vm895_vm10  ;;  %vm4363_vm13 = vcmp.lt.s32.totalorder %v2907_v16, %v3307_v30  ;;  %vm417_vm10 = vcmp.eq.f32.partialorder %v2870_v13, %v3279_v52 }
 0x248   : >> { %593 = vadd.xlane.f32.xlu1 %v590_v59  ;;  %v1053_v59 = vcvt.s32.f32 %v1051_v28  ;;  %v3309_v21 = vpop.trf.xlu1  ;;  %v1052_v28 = vcvt.s32.f32 %v1050_v61  ;;  %v927_v41 = vsel %vm911_vm6, 1, %v4394_v35  ;;  %vm433_vm12 = vmand %vm417_vm10, %vm4363_vm13 }
 0x249   : >> { %603 = vadd.xlane.f32.xlu0 %v601_v12  ;;  %v3292_v12 = vadd.s32 120, %v2864_v10  ;;  %v3302_v32 = vpop.trf.xlu0  ;;  %v1087_v26 = vshrl.u32 %v927_v41, 16  ;;  %vm880_vm10 = vcmp.eq.f32.partialorder %v2873_v15, %v3309_v21 }
 0x24a   : >> { %vm402_vm2 = vcmp.lt.f32.partialorder %v2870_v13, %v3302_v32 }
 0x24b   : >> { %4395 = vst [vmem:[#allocation14_spill] sm:$0xff] %v3292_v12  ;;  %vm4362_vm9 = vcmp.lt.s32.totalorder %v2907_v16, %v3292_v12 }
 0x24c   : >> { %591 = vadd.xlane.f32.xlu1 %v589_v58  ;;  %v463_v58 = vsel %vm447_vm14, 1, %v4394_v35  ;;  %vm418_vm14 = vcmp.eq.f32.partialorder %v2870_v13, %v3302_v32 }
 0x24d   : >> { %1068 = vadd.xlane.f32.xlu0 %v1065_v60  ;;  %v612_v14 = vshrl.u32 %v463_v58, 16  ;;  %vm434_vm11 = vmand %vm418_vm14, %vm4362_vm9  ;;  %v611_v61 = vand.u32 65535, %v463_v58  ;;  %v926_v60 = vsel %vm910_vm3, 1, %v4394_v35  ;;  %v1086_v58 = vand.u32 65535, %v927_v41 }
 0x24e   : >> { %vm450_vm6 = vmor %vm402_vm2, %vm434_vm11  ;;  %v1075_v37 = vshrl.u32 %v926_v60, 16 }
 0x24f   : >> { %vm449_vm3 = vmor %vm401_vm5, %vm433_vm12  ;;  %vm864_vm12 = vcmp.lt.f32.partialorder %v2873_v15, %v3309_v21 }
 0x250   : >> { %1056 = vadd.xlane.f32.xlu1 %v1053_v59  ;;  %v623_v59 = vand.u32 65535, %v464_v53  ;;  %v614_v53 = vcvt.s32.f32 %v612_v14  ;;  %v1089_v14 = vcvt.s32.f32 %v1087_v26  ;;  %v1077_v13 = vcvt.s32.f32 %v1075_v37  ;;  %vm896_vm11 = vmand %vm880_vm10, %vm4363_vm13 }
 0x251   : >> { %1066 = vadd.xlane.f32.xlu0 %v1064_v7  ;;  %v465_v41 = vsel %vm449_vm3, 1, %v4394_v35 }
 0x252   : >> { %v625_v7 = vcvt.s32.f32 %v623_v59  ;;  %v466_v59 = vsel %vm450_vm6, 1, %v4394_v35  ;;  %vm912_vm6 = vmor %vm864_vm12, %vm896_vm11 }
 0x253   : >> { %v647_v12 = vand.u32 65535, %v466_v59 }
 0x254   : >> { %1054 = vadd.xlane.f32.xlu1 %v1052_v28  ;;  %v3331_v28 = vpop.trf.xlu1 }
 0x255   : >> { %629 = vadd.xlane.f32.xlu0 %v626_v33  ;;  %v613_v33 = vcvt.s32.f32 %v611_v61  ;;  %vm881_vm14 = vcmp.eq.f32.partialorder %v2873_v15, %v3331_v28  ;;  %vm865_vm15 = vcmp.lt.f32.partialorder %v2873_v15, %v3331_v28  ;;  %v1088_v61 = vcvt.s32.f32 %v1086_v58 }
 0x256   : >> { %vm897_vm2 = vmand %vm881_vm14, %vm4362_vm9  ;;  %v635_v58 = vand.u32 65535, %v465_v41  ;;  %v649_v45 = vcvt.s32.f32 %v647_v12  ;;  %vm2774_vm14 = vmmov 0  }
 0x257   : >> { %vm913_vm5 = vmor %vm865_vm15, %vm897_vm2 }
 0x258   : >> { %617 = vadd.xlane.f32.xlu1 %v614_v53  ;;  %v1074_v53 = vand.u32 65535, %v926_v60  ;;  %v929_v37 = vsel %vm913_vm5, 1, %v4394_v35  ;;  %v637_v15 = vcvt.s32.f32 %v635_v58 }
 0x259   : >> { %627 = vadd.xlane.f32.xlu0 %v625_v7  ;;  %v648_v7 = vshrl.u32 %v466_v59, 16  ;;  %v1111_v30 = vshrl.u32 %v929_v37, 16 }
 0x25a   : >> { %v1076_v26 = vcvt.s32.f32 %v1074_v53  ;;  %v1110_v53 = vand.u32 65535, %v929_v37 }
 0x25b   : >> { %v1113_v50 = vcvt.s32.f32 %v1111_v30 }
 0x25c   : >> { %615 = vadd.xlane.f32.xlu1 %v613_v33  ;;  %v636_v33 = vshrl.u32 %v465_v41, 16 }
 0x25d   : >> { %1092 = vadd.xlane.f32.xlu0 %v1089_v14  ;;  %v650_v14 = vcvt.s32.f32 %v648_v7 }
 0x25e   : >> { %v638_v60 = vcvt.s32.f32 %v636_v33 }
 0x260   : >> { %1080 = vadd.xlane.f32.xlu1 %v1077_v13  ;;  %v928_v13 = vsel %vm912_vm6, 1, %v4394_v35 }
 0x261   : >> { %1090 = vadd.xlane.f32.xlu0 %v1088_v61  ;;  %v1099_v61 = vshrl.u32 %v928_v13, 16  ;;  %v1098_v7 = vand.u32 65535, %v928_v13 }
 0x263   : >> { %v1101_v59 = vcvt.s32.f32 %v1099_v61 }
 0x264   : >> { %1078 = vadd.xlane.f32.xlu1 %v1076_v26  ;;  %v1112_v26 = vcvt.s32.f32 %v1110_v53  ;;  %v4399_v53 = vmov 0.0  }
 0x265   : >> { %653 = vadd.xlane.f32.xlu0 %v650_v14  ;;  %v1100_v14 = vcvt.s32.f32 %v1098_v7  ;;  %2553 = vmatprep.mubr.msk.f32.mxu1 %vm2774_vm14, %v4399_v53 }
 0x266   : >> { %2588 = vmatprep.mubr.msk.f32.mxu0 %vm2774_vm14, %v4399_v53 }
 0x268   : >> { %641 = vadd.xlane.f32.xlu1 %v638_v60 }
 0x269   : >> { %651 = vadd.xlane.f32.xlu0 %v649_v45 }
 0x26c   : >> { %639 = vadd.xlane.f32.xlu1 %v637_v15 }
 0x26d   : >> { %1116 = vadd.xlane.f32.xlu0 %v1113_v50 }
 0x270   : >> { %1104 = vadd.xlane.f32.xlu1 %v1101_v59 }
 0x271   : >> { %1114 = vadd.xlane.f32.xlu0 %v1112_v26 }
 0x274   : >> { %1102 = vadd.xlane.f32.xlu1 %v1100_v14 }
 0x281   : >> { %v474_v41 = vpop.xlane.xlu1 %473 }
 0x282   : >> { %v476_v12 = vcvt.f32.s32 %v474_v41 }
 0x284   : >> { %v477_v56 = vshll.u32 %v476_v12, 16 }
 0x285   : >> { %v472_v33 = vpop.xlane.xlu1 %471 }
 0x286   : >> { %v486_v35 = vpop.xlane.xlu0 %485  ;;  %v475_v60 = vcvt.f32.s32 %v472_v33  ;;  %v4360_v33 = vmov 1.0|1.0  }
 0x287   : >> { %v488_v45 = vcvt.f32.s32 %v486_v35 }
 0x288   : >> { %v478_v58 = vadd.s32 %v477_v56, %v475_v60 }
 0x289   : >> { %v937_v27 = vpop.xlane.xlu1 %936  ;;  %v489_v15 = vshll.u32 %v488_v45, 16 }
 0x28a   : >> { %v484_v30 = vpop.xlane.xlu0 %483  ;;  %v939_v37 = vcvt.f32.s32 %v937_v27  ;;  %vm659_vm15 = vcmp.eq.s32.totalorder %v478_v58, %v2907_v16  ;;  %v4400_v58 = vmov 0.0|0.0  }
 0x28b   : >> { %v487_v50 = vcvt.f32.s32 %v484_v30  ;;  %v2387_v14 = vsel %vm659_vm15, 1.0, %v4399_v53 }
 0x28c   : >> { %v940_v59 = vshll.u32 %v939_v37, 16  ;;  %v707_v41 = vmul.f32 %v2387_v14, %v2914_v18 }
 0x28d   : >> { %v490_v13 = vadd.s32 %v489_v15, %v487_v50  ;;  %v935_v61 = vpop.xlane.xlu1 %934 }
 0x28e   : >> { %v947_v7 = vpop.xlane.xlu0 %946  ;;  %v938_v26 = vcvt.f32.s32 %v935_v61 }
 0x28f   : >> { %vm660_vm3 = vcmp.eq.s32.totalorder %v490_v13, %v2907_v16  ;;  %v950_v15 = vcvt.f32.s32 %v947_v7 }
 0x290   : >> { %v941_v56 = vadd.s32 %v940_v59, %v938_v26  ;;  %v2388_v27 = vsel %vm660_vm3, 1.0, %v4399_v53  ;;  %vm2592_vm10 = vmpackc.low %vm660_vm3, %vm659_vm15 }
 0x291   : >> { %v708_v12 = vmul.f32 %v2388_v27, %v2931_v20  ;;  %2593 = vmatpush3.bf16.msk.msra.mxu1 %vm2592_vm10, %v4360_v33  ;;  %v949_v35 = vpop.xlane.xlu1 %948 }
 0x292   : >> { %v510_v60 = vpop.xlane.xlu0 %509  ;;  %v951_v45 = vcvt.f32.s32 %v949_v35  ;;  %2594 = vmatprep.subr.bf16.mxu1 %v4400_v58  ;;  %vm1122_vm2 = vcmp.eq.s32.totalorder %v941_v56, %v2907_v16 }
 0x293   : >> { %v723_v30 = vadd.f32 %v708_v12, %v707_v41  ;;  %v512_v37 = vcvt.f32.s32 %v510_v60  ;;  %v2419_v20 = vsel %vm1122_vm2, 1.0, %v4399_v53 }
 0x294   : >> { %v952_v50 = vshll.u32 %v951_v45, 16  ;;  %v1170_v7 = vmul.f32 %v2419_v20, %v2920_v19  ;;  %v4401_v45 = vmov 1.0|1.0  }
 0x295   : >> { %v498_v13 = vpop.xlane.xlu1 %497  ;;  %v513_v26 = vshll.u32 %v512_v37, 16 }
 0x296   : >> { %v953_v61 = vadd.s32 %v952_v50, %v950_v15  ;;  %v508_v59 = vpop.xlane.xlu0 %507  ;;  %v500_v18 = vcvt.f32.s32 %v498_v13 }
 0x297   : >> { %v511_v14 = vcvt.f32.s32 %v508_v59 }
 0x298   : >> { %vm1123_vm11 = vcmp.eq.s32.totalorder %v953_v61, %v2907_v16  ;;  %v501_v41 = vshll.u32 %v500_v18, 16 }
 0x299   : >> { %v2420_v27 = vsel %vm1123_vm11, 1.0, %v4399_v53  ;;  %v514_v35 = vadd.s32 %v513_v26, %v511_v14  ;;  %v496_v33 = vpop.xlane.xlu1 %495  ;;  %vm2616_vm12 = vmpackc.low %vm1123_vm11, %vm1122_vm2 }
 0x29a   : >> { %v1171_v56 = vmul.f32 %v2420_v27, %v2941_v23  ;;  %v973_v12 = vpop.xlane.xlu0 %972  ;;  %v499_v60 = vcvt.f32.s32 %v496_v33  ;;  %2617 = vmatpush3.bf16.msk.msra.mxu0 %vm2616_vm12, %v4401_v45 }
 0x29b   : >> { %v975_v15 = vcvt.f32.s32 %v973_v12  ;;  %2618 = vmatprep.subr.bf16.mxu0 %v4400_v58  ;;  %vm662_vm5 = vcmp.eq.s32.totalorder %v514_v35, %v2907_v16 }
 0x29c   : >> { %v1186_v37 = vadd.f32 %v1171_v56, %v1170_v7  ;;  %v502_v50 = vadd.s32 %v501_v41, %v499_v60  ;;  %v2390_v33 = vsel %vm662_vm5, 1.0, %v4399_v53 }
 0x29d   : >> { %v961_v13 = vpop.xlane.xlu1 %960  ;;  %v976_v19 = vshll.u32 %v975_v15, 16  ;;  %v710_v35 = vmul.f32 %v2390_v33, %v2971_v36 }
 0x29e   : >> { %v971_v61 = vpop.xlane.xlu0 %970  ;;  %v963_v59 = vcvt.f32.s32 %v961_v13  ;;  %vm661_vm6 = vcmp.eq.s32.totalorder %v502_v50, %v2907_v16 }
 0x29f   : >> { %v974_v20 = vcvt.f32.s32 %v971_v61  ;;  %v2389_v23 = vsel %vm661_vm6, 1.0, %v4399_v53  ;;  %vm2595_vm15 = vmpackc.low %vm662_vm5, %vm661_vm6 }
 0x2a0   : >> { %v709_v18 = vmul.f32 %v2389_v23, %v2959_v29  ;;  %2596 = vmatpush3.bf16.msk.msra.mxu1 %vm2595_vm15, %v4401_v45  ;;  %v964_v27 = vshll.u32 %v963_v59, 16 }
 0x2a1   : >> { %v977_v26 = vadd.s32 %v976_v19, %v974_v20  ;;  %v959_v14 = vpop.xlane.xlu1 %958  ;;  %2597 = vmatprep.subr.bf16.mxu1 %v4400_v58 }
 0x2a2   : >> { %v724_v7 = vadd.f32 %v723_v30, %v709_v18  ;;  %v534_v56 = vpop.xlane.xlu0 %533  ;;  %v962_v41 = vcvt.f32.s32 %v959_v14 }
 0x2a3   : >> { %v536_v12 = vcvt.f32.s32 %v534_v56  ;;  %vm1125_vm14 = vcmp.eq.s32.totalorder %v977_v26, %v2907_v16 }
 0x2a4   : >> { %v725_v60 = vadd.f32 %v724_v7, %v710_v35  ;;  %v965_v15 = vadd.s32 %v964_v27, %v962_v41  ;;  %v2422_v61 = vsel %vm1125_vm14, 1.0, %v4399_v53 }
 0x2a5   : >> { %v522_v50 = vpop.xlane.xlu1 %521  ;;  %v537_v19 = vshll.u32 %v536_v12, 16  ;;  %v1173_v33 = vmul.f32 %v2422_v61, %v2984_v40 }
 0x2a6   : >> { %vm1124_vm3 = vcmp.eq.s32.totalorder %v965_v15, %v2907_v16  ;;  %v532_v29 = vpop.xlane.xlu0 %531  ;;  %v524_v13 = vcvt.f32.s32 %v522_v50 }
 0x2a7   : >> { %v2421_v59 = vsel %vm1124_vm3, 1.0, %v4399_v53  ;;  %vm2619_vm10 = vmpackc.low %vm1125_vm14, %vm1124_vm3  ;;  %v535_v36 = vcvt.f32.s32 %v532_v29 }
 0x2a8   : >> { %v1172_v30 = vmul.f32 %v2421_v59, %v2962_v31  ;;  %2620 = vmatpush3.bf16.msk.msra.mxu0 %vm2619_vm10, %v4401_v45  ;;  %v525_v26 = vshll.u32 %v524_v13, 16 }
 0x2a9   : >> { %v538_v20 = vadd.s32 %v537_v19, %v535_v36  ;;  %v520_v23 = vpop.xlane.xlu1 %519  ;;  %2621 = vmatprep.subr.bf16.mxu0 %v4400_v58 }
 0x2aa   : >> { %v1187_v18 = vadd.f32 %v1186_v37, %v1172_v30  ;;  %v997_v14 = vpop.xlane.xlu0 %996  ;;  %v523_v27 = vcvt.f32.s32 %v520_v23 }
 0x2ab   : >> { %vm664_vm2 = vcmp.eq.s32.totalorder %v538_v20, %v2907_v16  ;;  %v999_v35 = vcvt.f32.s32 %v997_v14 }
 0x2ac   : >> { %v526_v7 = vadd.s32 %v525_v26, %v523_v27  ;;  %v3388_v56 = vadd.f32 %v1187_v18, %v1173_v33  ;;  %v2392_v15 = vsel %vm664_vm2, 1.0, %v4399_v53 }
 0x2ad   : >> { %v985_v41 = vpop.xlane.xlu1 %984  ;;  %v1000_v37 = vshll.u32 %v999_v35, 16  ;;  %v712_v13 = vmul.f32 %v2392_v15, %v3017_v55 }
 0x2ae   : >> { %v995_v31 = vpop.xlane.xlu0 %994  ;;  %v987_v12 = vcvt.f32.s32 %v985_v41  ;;  %vm663_vm11 = vcmp.eq.s32.totalorder %v526_v7, %v2907_v16 }
 0x2af   : >> { %v998_v50 = vcvt.f32.s32 %v995_v31  ;;  %v2391_v40 = vsel %vm663_vm11, 1.0, %v4399_v53  ;;  %vm2598_vm12 = vmpackc.low %vm664_vm2, %vm663_vm11 }
 0x2b0   : >> { %v711_v29 = vmul.f32 %v2391_v40, %v2994_v44  ;;  %2599 = vmatpush3.bf16.msk.msra.mxu1 %vm2598_vm12, %v4401_v45  ;;  %v988_v59 = vshll.u32 %v987_v12, 16 }
 0x2b1   : >> { %v983_v61 = vpop.xlane.xlu1 %982  ;;  %2600 = vmatprep.subr.bf16.mxu1 %v4400_v58  ;;  %v3397_v19 = vadd.s32 %v1000_v37, %v998_v50 }
 0x2b2   : >> { %v726_v36 = vadd.f32 %v725_v60, %v711_v29  ;;  %v558_v30 = vpop.xlane.xlu0 %557  ;;  %v986_v20 = vcvt.f32.s32 %v983_v61 }
 0x2b3   : >> { %v560_v33 = vcvt.f32.s32 %v558_v30  ;;  %vm1127_vm5 = vcmp.eq.s32.totalorder %v3397_v19, %v2907_v16 }
 0x2b4   : >> { %v3399_v23 = vadd.f32 %v726_v36, %v712_v13  ;;  %v3401_v18 = vadd.s32 %v988_v59, %v986_v20 }
 0x2b5   : >> { %v546_v26 = vpop.xlane.xlu1 %545  ;;  %v561_v14 = vshll.u32 %v560_v33, 16 }
 0x2b6   : >> { %vm1126_vm6 = vcmp.eq.s32.totalorder %v3401_v18, %v2907_v16  ;;  %v556_v44 = vpop.xlane.xlu0 %555  ;;  %v548_v55 = vcvt.f32.s32 %v546_v26 }
 0x2b7   : >> { %vm2622_vm15 = vmpackc.low %vm1127_vm5, %vm1126_vm6  ;;  %v559_v60 = vcvt.f32.s32 %v556_v44 }
 0x2b8   : >> { %2623 = vmatpush3.bf16.msk.msra.mxu0 %vm2622_vm15, %v4401_v45  ;;  %v549_v7 = vshll.u32 %v548_v55, 16 }
 0x2b9   : >> { %v544_v27 = vpop.xlane.xlu1 %543  ;;  %2624 = vmatprep.subr.bf16.mxu0 %v4400_v58  ;;  %v3415_v35 = vadd.s32 %v561_v14, %v559_v60 }
 0x2ba   : >> { %v1021_v41 = vpop.xlane.xlu0 %1020  ;;  %v547_v31 = vcvt.f32.s32 %v544_v27 }
 0x2bb   : >> { %v1023_v12 = vcvt.f32.s32 %v1021_v41  ;;  %vm666_vm3 = vcmp.eq.s32.totalorder %v3415_v35, %v2907_v16 }
 0x2bc   : >> { %v3417_v15 = vadd.s32 %v549_v7, %v547_v31 }
 0x2bd   : >> { %v1009_v50 = vpop.xlane.xlu1 %1008  ;;  %v1024_v13 = vshll.u32 %v1023_v12, 16 }
 0x2be   : >> { %v1019_v40 = vpop.xlane.xlu0 %1018  ;;  %v1011_v37 = vcvt.f32.s32 %v1009_v50  ;;  %vm665_vm14 = vcmp.eq.s32.totalorder %v3417_v15, %v2907_v16 }
 0x2bf   : >> { %v1022_v29 = vcvt.f32.s32 %v1019_v40  ;;  %vm2601_vm10 = vmpackc.low %vm666_vm3, %vm665_vm14 }
 0x2c0   : >> { %2602 = vmatpush3.bf16.msk.msra.mxu1 %vm2601_vm10, %v4401_v45  ;;  %v1012_v36 = vshll.u32 %v1011_v37, 16 }
 0x2c1   : >> { %v1007_v61 = vpop.xlane.xlu1 %1006  ;;  %2603 = vmatprep.subr.bf16.mxu1 %v4400_v58  ;;  %v3431_v59 = vadd.s32 %v1024_v13, %v1022_v29 }
 0x2c2   : >> { %v582_v30 = vpop.xlane.xlu0 %581  ;;  %v1010_v20 = vcvt.f32.s32 %v1007_v61 }
 0x2c3   : >> { %v584_v33 = vcvt.f32.s32 %v582_v30  ;;  %vm1129_vm2 = vcmp.eq.s32.totalorder %v3431_v59, %v2907_v16 }
 0x2c4   : >> { %v3433_v26 = vadd.s32 %v1012_v36, %v1010_v20 }
 0x2c5   : >> { %v570_v44 = vpop.xlane.xlu1 %569  ;;  %v585_v27 = vshll.u32 %v584_v33, 16 }
 0x2c6   : >> { %vm1128_vm11 = vcmp.eq.s32.totalorder %v3433_v26, %v2907_v16  ;;  %v580_v55 = vpop.xlane.xlu0 %579  ;;  %v572_v60 = vcvt.f32.s32 %v570_v44 }
 0x2c7   : >> { %vm2625_vm12 = vmpackc.low %vm1129_vm2, %vm1128_vm11  ;;  %v583_v14 = vcvt.f32.s32 %v580_v55  ;;  %v2425_v19 = vsel %vm1128_vm11, 1.0, %v4399_v53 }
 0x2c8   : >> { %2626 = vmatpush3.bf16.msk.msra.mxu0 %vm2625_vm12, %v4401_v45  ;;  %v573_v31 = vshll.u32 %v572_v60, 16 }
 0x2c9   : >> { %v568_v7 = vpop.xlane.xlu1 %567  ;;  %2627 = vmatprep.subr.bf16.mxu0 %v4400_v58  ;;  %v3447_v41 = vadd.s32 %v585_v27, %v583_v14 }
 0x2ca   : >> { %v1045_v12 = vpop.xlane.xlu0 %1044  ;;  %v571_v50 = vcvt.f32.s32 %v568_v7 }
 0x2cb   : >> { %v1047_v40 = vcvt.f32.s32 %v1045_v12  ;;  %vm668_vm10 = vcmp.eq.s32.totalorder %v3447_v41, %v2907_v16 }
 0x2cc   : >> { %v3449_v37 = vadd.s32 %v573_v31, %v571_v50 }
 0x2cd   : >> { %v1033_v29 = vpop.xlane.xlu1 %1032  ;;  %v1048_v30 = vshll.u32 %v1047_v40, 16 }
 0x2ce   : >> { %v1043_v13 = vpop.xlane.xlu0 %1042  ;;  %v1035_v61 = vcvt.f32.s32 %v1033_v29  ;;  %vm667_vm15 = vcmp.eq.s32.totalorder %v3449_v37, %v2907_v16 }
 0x2cf   : >> { %v1046_v36 = vcvt.f32.s32 %v1043_v13  ;;  %vm2604_vm12 = vmpackc.low %vm668_vm10, %vm667_vm15 }
 0x2d0   : >> { %2605 = vmatpush3.bf16.msk.msra.mxu1 %vm2604_vm12, %v4401_v45  ;;  %v1036_v44 = vshll.u32 %v1035_v61, 16 }
 0x2d1   : >> { %v1031_v20 = vpop.xlane.xlu1 %1030  ;;  %2606 = vmatprep.subr.bf16.mxu1 %v4400_v58  ;;  %v3463_v33 = vadd.s32 %v1048_v30, %v1046_v36 }
 0x2d2   : >> { %v606_v55 = vpop.xlane.xlu0 %605  ;;  %v1034_v60 = vcvt.f32.s32 %v1031_v20 }
 0x2d3   : >> { %v608_v14 = vcvt.f32.s32 %v606_v55  ;;  %vm1131_vm9 = vcmp.eq.s32.totalorder %v3463_v33, %v2907_v16 }
 0x2d4   : >> { %v3465_v27 = vadd.s32 %v1036_v44, %v1034_v60 }
 0x2d5   : >> { %v594_v7 = vpop.xlane.xlu1 %593  ;;  %v609_v40 = vshll.u32 %v608_v14, 16 }
 0x2d6   : >> { %vm1130_vm13 = vcmp.eq.s32.totalorder %v3465_v27, %v2907_v16  ;;  %v604_v31 = vpop.xlane.xlu0 %603  ;;  %v596_v12 = vcvt.f32.s32 %v594_v7 }
 0x2d7   : >> { %vm2628_vm12 = vmpackc.low %vm1131_vm9, %vm1130_vm13  ;;  %v607_v50 = vcvt.f32.s32 %v604_v31 }
 0x2d8   : >> { %2629 = vmatpush3.bf16.msk.msra.mxu0 %vm2628_vm12, %v4401_v45  ;;  %v597_v61 = vshll.u32 %v596_v12, 16  ;;  %v2423_v12 = vsel %vm1126_vm6, 1.0, %v4399_v53 }
 0x2d9   : >> { %v592_v29 = vpop.xlane.xlu1 %591  ;;  %2630 = vmatprep.subr.bf16.mxu0 %v4400_v58  ;;  %v3479_v13 = vadd.s32 %v609_v40, %v607_v50  ;;  %v2393_v40 = vsel %vm665_vm14, 1.0, %v4399_v53 }
 0x2da   : >> { %v1069_v36 = vpop.xlane.xlu0 %1068  ;;  %v595_v30 = vcvt.f32.s32 %v592_v29  ;;  %v713_v18 = vmul.f32 %v2393_v40, %v3050_v24  ;;  %v2394_v24 = vsel %vm666_vm3, 1.0, %v4399_v53 }
 0x2db   : >> { %v1071_v20 = vcvt.f32.s32 %v1069_v36  ;;  %vm670_vm4 = vcmp.eq.s32.totalorder %v3479_v13, %v2907_v16 }
 0x2dc   : >> { %v598_v44 = vadd.s32 %v597_v61, %v595_v30 }
 0x2dd   : >> { %v1057_v55 = vpop.xlane.xlu1 %1056  ;;  %v1072_v31 = vshll.u32 %v1071_v20, 16 }
 0x2de   : >> { %v1067_v60 = vpop.xlane.xlu0 %1066  ;;  %v1059_v7 = vcvt.f32.s32 %v1057_v55  ;;  %vm669_vm8 = vcmp.eq.s32.totalorder %v598_v44, %v2907_v16 }
 0x2df   : >> { %v1070_v14 = vcvt.f32.s32 %v1067_v60  ;;  %vm2607_vm12 = vmpackc.low %vm670_vm4, %vm669_vm8  ;;  %v1174_v60 = vmul.f32 %v2423_v12, %v3024_v57  ;;  %v2424_v57 = vsel %vm1127_vm5, 1.0, %v4399_v53 }
 0x2e0   : >> { %2608 = vmatpush3.bf16.msk.msra.mxu1 %vm2607_vm12, %v4401_v45  ;;  %v1060_v61 = vshll.u32 %v1059_v7, 16 }
 0x2e1   : >> { %v1055_v50 = vpop.xlane.xlu1 %1054  ;;  %2609 = vmatprep.subr.bf16.mxu1 %v4400_v58  ;;  %v3499_v29 = vadd.s32 %v1072_v31, %v1070_v14  ;;  %v1189_v12 = vadd.f32 %v3388_v56, %v1174_v60 }
 0x2e2   : >> { %v630_v36 = vpop.xlane.xlu0 %629  ;;  %v1058_v30 = vcvt.f32.s32 %v1055_v50  ;;  %v728_v50 = vadd.f32 %v3399_v23, %v713_v18  ;;  %v1176_v23 = vmul.f32 %v2425_v19, %v3080_v46  ;;  %v2426_v46 = vsel %vm1129_vm2, 1.0, %v4399_v53 }
 0x2e3   : >> { %v632_v20 = vcvt.f32.s32 %v630_v36  ;;  %vm1133_vm6 = vcmp.eq.s32.totalorder %v3499_v29, %v2907_v16 }
 0x2e4   : >> { %v3501_v55 = vadd.s32 %v1060_v61, %v1058_v30  ;;  %v1175_v30 = vmul.f32 %v2424_v57, %v3046_v22  ;;  %v2397_v22 = vsel %vm669_vm8, 1.0, %v4399_v53 }
 0x2e5   : >> { %v618_v25 = vpop.xlane.xlu1 %617  ;;  %v633_v31 = vshll.u32 %v632_v20, 16  ;;  %v714_v20 = vmul.f32 %v2394_v24, %v3073_v43  ;;  %v2427_v24 = vsel %vm1130_vm13, 1.0, %v4399_v53 }
 0x2e6   : >> { %vm1132_vm12 = vcmp.eq.s32.totalorder %v3501_v55, %v2907_v16  ;;  %v628_v15 = vpop.xlane.xlu0 %627  ;;  %v620_v14 = vcvt.f32.s32 %v618_v25  ;;  %v2395_v25 = vsel %vm667_vm15, 1.0, %v4399_v53  ;;  %v1178_v27 = vmul.f32 %v2427_v24, %v3141_v42 }
 0x2e7   : >> { %vm2631_vm14 = vmpackc.low %vm1133_vm6, %vm1132_vm12  ;;  %v631_v7 = vcvt.f32.s32 %v628_v15  ;;  %v715_v56 = vmul.f32 %v2395_v25, %v3111_v63  ;;  %v729_v26 = vadd.f32 %v728_v50, %v714_v20  ;;  %v1190_v15 = vadd.f32 %v1189_v12, %v1175_v30 }
 0x2e8   : >> { %2632 = vmatpush3.bf16.msk.msra.mxu0 %vm2631_vm14, %v4401_v45  ;;  %v621_v61 = vshll.u32 %v620_v14, 16  ;;  %v1177_v50 = vmul.f32 %v2426_v46, %v3107_v62  ;;  %v2398_v62 = vsel %vm670_vm4, 1.0, %v4399_v53  ;;  %v2429_v42 = vsel %vm1132_vm12, 1.0, %v4399_v53 }
 0x2e9   : >> { %v616_v40 = vpop.xlane.xlu1 %615  ;;  %2633 = vmatprep.subr.bf16.mxu0 %v4400_v58  ;;  %v3535_v35 = vadd.s32 %v633_v31, %v631_v7  ;;  %v2396_v7 = vsel %vm668_vm10, 1.0, %v4399_v53  ;;  %v730_v63 = vadd.f32 %v729_v26, %v715_v56  ;;  %v1191_v44 = vadd.f32 %v1190_v15, %v1176_v23 }
 0x2ea   : >> { %v1093_v37 = vpop.xlane.xlu0 %1092  ;;  %v619_v36 = vcvt.f32.s32 %v616_v40  ;;  %v716_v59 = vmul.f32 %v2396_v7, %v3134_v39  ;;  %v717_v31 = vmul.f32 %v2397_v22, %v3167_v9  ;;  %v2428_v39 = vsel %vm1131_vm9, 1.0, %v4399_v53 }
 0x2eb   : >> { %v1095_v60 = vcvt.f32.s32 %v1093_v37  ;;  %vm672_vm3 = vcmp.eq.s32.totalorder %v3535_v35, %v2907_v16  ;;  %v1192_v20 = vadd.f32 %v1191_v44, %v1177_v50  ;;  %v718_v7 = vmul.f32 %v2398_v62, %v3190_v51 }
 0x2ec   : >> { %v622_v18 = vadd.s32 %v621_v61, %v619_v36  ;;  %v731_v36 = vadd.f32 %v730_v63, %v716_v59  ;;  %v1180_v22 = vmul.f32 %v2429_v42, %v3197_v54  ;;  %v2430_v51 = vsel %vm1133_vm6, 1.0, %v4399_v53 }
 0x2ed   : >> { %v1081_v14 = vpop.xlane.xlu1 %1080  ;;  %v1096_v25 = vshll.u32 %v1095_v60, 16  ;;  %v1193_v13 = vadd.f32 %v1192_v20, %v1178_v27  ;;  %v1181_v29 = vmul.f32 %v2430_v51, %v3219_v34 }
 0x2ee   : >> { %v1091_v57 = vpop.xlane.xlu0 %1090  ;;  %v1083_v43 = vcvt.f32.s32 %v1081_v14  ;;  %vm671_vm5 = vcmp.eq.s32.totalorder %v622_v18, %v2907_v16  ;;  %v732_v9 = vadd.f32 %v731_v36, %v717_v31  ;;  %v1179_v14 = vmul.f32 %v2428_v39, %v3163_v8 }
 0x2ef   : >> { %v1094_v41 = vcvt.f32.s32 %v1091_v57  ;;  %vm2610_vm8 = vmpackc.low %vm672_vm3, %vm671_vm5  ;;  %v2399_v23 = vsel %vm671_vm5, 1.0, %v4399_v53  ;;  %v2400_v8 = vsel %vm672_vm3, 1.0, %v4399_v53  ;;  %vm1318_vm3 = vcmask 7168  }
 0x2f0   : >> { %2611 = vmatpush3.bf16.msk.msra.mxu1 %vm2610_vm8, %v4401_v45  ;;  %v1084_v40 = vshll.u32 %v1083_v43, 16  ;;  %v719_v55 = vmul.f32 %v2399_v23, %v3223_v38  ;;  %v733_v46 = vadd.f32 %v732_v9, %v718_v7  ;;  %v1194_v38 = vadd.f32 %v1193_v13, %v1179_v14 }
 0x2f1   : >> { %v1079_v12 = vpop.xlane.xlu1 %1078  ;;  %2612 = vmatprep.subr.bf16.mxu1 %v4400_v58  ;;  %v3569_v19 = vadd.s32 %v1096_v25, %v1094_v41 }
 0x2f2   : >> { %v654_v61 = vpop.xlane.xlu0 %653  ;;  %v1082_v37 = vcvt.f32.s32 %v1079_v12  ;;  %v734_v24 = vadd.f32 %v733_v46, %v719_v55  ;;  %v720_v12 = vmul.f32 %v2400_v8, %v3246_v47 }
 0x2f3   : >> { %v656_v30 = vcvt.f32.s32 %v654_v61  ;;  %vm1135_vm13 = vcmp.eq.s32.totalorder %v3569_v19, %v2907_v16 }
 0x2f4   : >> { %v1085_v56 = vadd.s32 %v1084_v40, %v1082_v37  ;;  %v735_v27 = vadd.f32 %v734_v24, %v720_v12 }
 0x2f5   : >> { %v642_v60 = vpop.xlane.xlu1 %641  ;;  %v657_v15 = vshll.u32 %v656_v30, 16 }
 0x2f6   : >> { %vm1134_vm9 = vcmp.eq.s32.totalorder %v1085_v56, %v2907_v16  ;;  %v652_v33 = vpop.xlane.xlu0 %651  ;;  %v644_v26 = vcvt.f32.s32 %v642_v60  ;;  %v2432_v60 = vsel %vm1135_vm13, 1.0, %v4399_v53 }
 0x2f7   : >> { %vm2634_vm4 = vmpackc.low %vm1135_vm13, %vm1134_vm9  ;;  %v655_v18 = vcvt.f32.s32 %v652_v33  ;;  %v2431_v59 = vsel %vm1134_vm9, 1.0, %v4399_v53  ;;  %v1183_v33 = vmul.f32 %v2432_v60, %v3275_v49 }
 0x2f8   : >> { %2635 = vmatpush3.bf16.msk.msra.mxu0 %vm2634_vm4, %v4401_v45  ;;  %v645_v63 = vshll.u32 %v644_v26, 16  ;;  %v1182_v30 = vmul.f32 %v2431_v59, %v3253_v48 }
 0x2f9   : >> { %v658_v57 = vadd.s32 %v657_v15, %v655_v18  ;;  %v640_v43 = vpop.xlane.xlu1 %639  ;;  %2636 = vmatprep.subr.bf16.mxu0 %v4400_v58  ;;  %v1195_v58 = vadd.f32 %v1194_v38, %v1180_v22 }
 0x2fa   : >> { %v1117_v41 = vpop.xlane.xlu0 %1116  ;;  %v643_v44 = vcvt.f32.s32 %v640_v43 }
 0x2fb   : >> { %v1119_v54 = vcvt.f32.s32 %v1117_v41  ;;  %vm674_vm2 = vcmp.eq.s32.totalorder %v658_v57, %v2907_v16  ;;  %v1196_v34 = vadd.f32 %v1195_v58, %v1181_v29 }
 0x2fc   : >> { %v646_v25 = vadd.s32 %v645_v63, %v643_v44  ;;  %v2402_v36 = vsel %vm674_vm2, 1.0, %v4399_v53 }
 0x2fd   : >> { %v1105_v31 = vpop.xlane.xlu1 %1104  ;;  %v1120_v35 = vshll.u32 %v1119_v54, 16  ;;  %v722_v62 = vmul.f32 %v2402_v36, %v3302_v32  ;;  %v1197_v48 = vadd.f32 %v1196_v34, %v1182_v30 }
 0x2fe   : >> { %v1115_v50 = vpop.xlane.xlu0 %1114  ;;  %v1107_v40 = vcvt.f32.s32 %v1105_v31  ;;  %vm673_vm11 = vcmp.eq.s32.totalorder %v646_v25, %v2907_v16  ;;  %v1302_v31 = vsub.f32 1.0, %v1298_v3 }
 0x2ff   : >> { %v1118_v61 = vcvt.f32.s32 %v1115_v50  ;;  %v2401_v37 = vsel %vm673_vm11, 1.0, %v4399_v53  ;;  %vm2613_vm15 = vmpackc.low %vm674_vm2, %vm673_vm11  ;;  %v1198_v19 = vadd.f32 %v1197_v48, %v1183_v33 }
 0x300   : >> { %v721_v20 = vmul.f32 %v2401_v37, %v3279_v52  ;;  %2614 = vmatpush3.bf16.msk.msra.mxu1 %vm2613_vm15, %v4401_v45  ;;  %v1108_v39 = vshll.u32 %v1107_v40, 16 }
 0x301   : >> { %v1121_v47 = vadd.s32 %v1120_v35, %v1118_v61  ;;  %v1103_v56 = vpop.xlane.xlu1 %1102  ;;  %v1293_v61 = vmul.f32 0.999, %v2757_v5 }
 0x302   : >> { %v736_v9 = vadd.f32 %v735_v27, %v721_v20  ;;  %v1106_v23 = vcvt.f32.s32 %v1103_v56  ;;  %v1299_v20 = vsub.f32 1.0, %v1297_v4 }
 0x303   : >> { %2554 = vmatmul.mubr.f32.vlgmr.msra.gmra.mrb[0].mxu1 %v2825_v0  ;;  %vm1137_vm10 = vcmp.eq.s32.totalorder %v1121_v47, %v2907_v16 }
 0x304   : >> { %v737_v52 = vadd.f32 %v736_v9, %v722_v62  ;;  %v1109_v42 = vadd.s32 %v1108_v39, %v1106_v23  ;;  %v2434_v32 = vsel %vm1137_vm10, 1.0, %v4399_v53  ;;  %v1290_v62 = vmul.f32 0.9, %v2761_v6 }
 0x305   : >> { %v1185_v7 = vmul.f32 %v2434_v32, %v3331_v28 }
 0x306   : >> { %v738_v26 = vrot.slane %v737_v52, 4  ;;  %vm1136_vm6 = vcmp.eq.s32.totalorder %v1109_v42, %v2907_v16 }
 0x307   : >> { %v2433_v13 = vsel %vm1136_vm6, 1.0, %v4399_v53  ;;  %vm2637_vm12 = vmpackc.low %vm1137_vm10, %vm1136_vm6 }
 0x308   : >> { %v739_v15 = vadd.f32 %v738_v26, %v737_v52  ;;  %v1184_v18 = vmul.f32 %v2433_v13, %v3309_v21  ;;  %2638 = vmatpush3.bf16.msk.msra.mxu0 %vm2637_vm12, %v4401_v45 }
 0x309   : > { %1399 = vmatprep.subr.mxu0 (%p200_p4), %v2827_v1 }
 0x30a   : >> { %v1199_v55 = vadd.f32 %v1198_v19, %v1184_v18  ;;  %v740_v14 = vrot.slane %v739_v15, 2 }
 0x30b   : >> { %2589 = vmatmul.mubr.f32.vlgmr.msra.gmra.mrb[2].mxu0 %v2827_v1 }
 0x30c   : >> { %v1200_v49 = vadd.f32 %v1199_v55, %v1185_v7  ;;  %v741_v57 = vadd.f32 %v740_v14, %v739_v15  ;;  %1400 = vmatpush1.msra.mxu0 (%p200_p4), %v2825_v0  ;;  %v2777_v0 = vmov (%p200_p4), 0  }
 0x30e   : >> { %v1201_v22 = vrot.slane %v1200_v49, 4  ;;  %v742_v63 = vrot.slane %v741_v57, 1 }
 0x310   : >> { %v1202_v43 = vadd.f32 %v1201_v22, %v1200_v49  ;;  %v743_v44 = vadd.f32 %v742_v63, %v741_v57 }
 0x312   : >> { %v1203_v46 = vrot.slane %v1202_v43, 2 }
 0x314   : >> { %v1204_v53 = vadd.f32 %v1203_v46, %v1202_v43 }
 0x316   : >> { %v1205_v41 = vrot.slane %v1204_v53, 1 }
 0x318   : >> { %v1206_v51 = vadd.f32 %v1205_v41, %v1204_v53 }
 0x31a   : >> { %v1277_v38 = vsub.f32 %v743_v44, %v1206_v51 }
 0x31c   : >> { %v1278_v21 = vmul.f32 %v1277_v38, %v1277_v38 }
 0x31e   : >> { %1279 = vadd.xlane.f32.xlu1 %v1278_v21 }
 0x3ab   : >> { %v1280_v58 = vpop.xlane.xlu1 %1279 }
 0x3ac   : >> { %v1286_v59 = vmax.f32 %v1280_v58, 1e-30 }
 0x3ae   : >> { %2702 = vrsqrt.f32 %v1286_v59 }
 0x3af   : >> { %2704 = vrcp.f32 %v1302_v31 }
 0x3b8   : >> { %v2703_v29 = vpop.eup %2702 }
 0x3b9   : >> { %v1288_v50 = vmul.f32 -0.25, %v2703_v29  ;;  %v2705_v27 = vpop.eup %2704  ;;  %v4406_v29 = vld [vmem:[#allocation2_spill] sm:$0xff] (%p200_p4) }
 0x3d6   : >> { %v810_v45 = vpop.f32.mrb[0].mxu1 }
 0x3d7   : >> { %v2555_v8 = vpop.f32.mrb[1].mxu1 }
 0x3de   : >> { %v1273_v28 = vpop.f32.mrb[2].mxu0 }
 0x3df   : >> { %v1281_v54 = vsub.f32 %v810_v45, %v1273_v28  ;;  %v2590_v24 = vpop.f32.mrb[3].mxu0 }
 0x3e1   : >> { %v1282_v25 = vmul.f32 %v1281_v54, %v1277_v38 }
 0x3e3   : >> { %1283 = vadd.xlane.f32.xlu0 %v1282_v25 }
 0x470   : >> { %v1284_v12 = vpop.xlane.xlu0 %1283 }
 0x471   : >> { %v1285_v40 = vmul.f32 2.0, %v1284_v12 }
 0x473   : >> { %v1289_v35 = vmul.f32 %v1288_v50, %v1285_v40  ;;  %v4410_v50 = vld [vmem:[#allocation3_spill] sm:$0xff] (%p200_p4) }
 0x475   : >> { %v1294_v37 = vmul.f32 %v1289_v35, %v1289_v35  ;;  %v1291_v9 = vmul.f32 0.1, %v1289_v35 }
 0x477   : >> { %v1295_v36 = vmul.f32 0.001, %v1294_v37  ;;  %v1292_v6 = vadd.f32 %v1291_v9, %v1290_v62  }
 0x479   : >> { %v1296_v5 = vadd.f32 %v1295_v36, %v1293_v61  }
 0x47b   : >> { %v1304_v30 = vmul.f32 %v2705_v27, %v1296_v5 }
 0x47d   : >> { %2706 = vrsqrt.f32 %v1304_v30  ;;  %vm1308_vm14 = vcmp.eq.f32.partialorder %v1304_v30, inf  ;;  %v1311_v56 = vand.u32 2147483648, %v1304_v30  ;;  %vm1310_vm5 = vcmp.eq.f32.partialorder %v1304_v30, 0.0 }
 0x47e   : >> { %2708 = vrcp.f32 %v1299_v20 }
 0x487   : >> { %v2707_v34 = vpop.eup %2706 }
 0x488   : >> { %v1307_v47 = vmul.f32 %v2707_v34, %v1304_v30  ;;  %v2709_v48 = vpop.eup %2708  ;;  %v4413_v34 = vld [vmem:[#allocation5_spill] sm:$0xff] (%p200_p4) }
 0x489   : >> { %v1301_v52 = vmul.f32 %v2709_v48, %v1292_v6  ;;  %v4416_v48 = vld [vmem:[#allocation4_spill] sm:$0xff] (%p200_p4) }
 0x48a   : >> { %v1309_v39 = vsel %vm1308_vm14, %v1304_v30, %v1307_v47 }
 0x48b   : >> { %v1312_v23 = vsel %vm1310_vm5, %v1311_v56, %v1309_v39  ;;  %v1305_v42 = vmul.f32 0.01, %v1301_v52 }
 0x48c   : >> { %v1313_v60 = vadd.f32 1e-08, %v1312_v23 }
 0x48e   : >> { %2710 = vrcp.f32 %v1313_v60 }
 0x498   : >> { %v2711_v33 = vpop.eup %2710 }
 0x499   : >> { %v1315_v26 = vmul.f32 %v2711_v33, %v1305_v42 }
 0x49b   : >> { %v1316_v32 = vsub.f32 %v2765_v2, %v1315_v26 }
 0x49d   : >> { %v1317_v13 = vmul.f32 %v1316_v32, %v1316_v32 }
 0x49f   : >> { %v1319_v15 = vsel %vm1318_vm3, %v1317_v13, 0.0 }
 0x4a0   : >> { %v1320_v19 = vrot.slane %v1319_v15, 4 }
 0x4a2   : >> { %v1321_v18 = vadd.f32 %v1320_v19, %v1319_v15 }
 0x4a4   : >> { %v1322_v7 = vrot.slane %v1321_v18, 2 }
 0x4a6   : >> { %v1323_v55 = vadd.f32 %v1322_v7, %v1321_v18 }
 0x4a8   : >> { %v1324_v49 = vrot.slane %v1323_v55, 1 }
 0x4aa   : >> { %v1325_v14 = vadd.f32 %v1324_v49, %v1323_v55 }
 0x4ac   : >> { %2712 = vrsqrt.f32 %v1325_v14 }
 0x4b4   : > { %202 = sbr.rel (!%p200_p4) target bundleno = 20 (0x14), region = 80 }
 0x4b6   : >> { %v2713_v22 = vpop.eup %2712 }
 0x4b7   : >> { %v3641_v2 = vmul.f32 %v2713_v22, %v1316_v32   ;;  %v4420_v22 = vld [vmem:[#allocation7_spill] sm:$0xff] (%p200_p4) }
 0x4b9   : >> { %v4402_v57 = vmov %v3641_v2 }
 0x4ba   : >> { %v4403_v2 = vmov %v4402_v57  ;;  %1363 = vxpose.xlu0.b32.start.end [1/1] (short) (narrow) (%p200_p4), %v4402_v57, 8 }
 0x4bb   : > { %v4368_v2 = vmov 0.0  }
 0x4bc   : > { %1463 = vmatprep.mubr.f32.mxu0 %v4368_v2 }
 0x53a   : > { %v1379_v43 = vpop.trf.xlu0 }
 0x53b   : > { %2451 = vmatmul.mubr.msk.f32.vlgmr.msra.gmra.mrb[0].mxu0 %vm276_vm0, %v1379_v43 }
 0x60e   : > { %v1465_v46 = vpop.f32.mrb[0].mxu0 }
 0x60f   : > { %v3663_v63 = vrot.slane %v1465_v46, %v2867_v11  ;;  %v1467_v53 = vpop.f32.mrb[1].mxu0 }
 0x610   : > { %v3666_v41 = vrot.slane %v1467_v53, %v2867_v11 }
 0x611   : > { %1474 = vxpose.xlu0.b32.start [1/16] %v3663_v63, 128 }
 0x612   : > { %1867 = vxpose.xlu1.b32.start [1/16] %v3666_v41, 128 }
 0x615   : > { %1475 = vxpose.xlu0.b32.cont [2/16] %v3663_v63, 128 }
 0x616   : > { %1868 = vxpose.xlu1.b32.cont [2/16] %v3666_v41, 128 }
 0x619   : > { %1476 = vxpose.xlu0.b32.cont [3/16] %v3663_v63, 128 }
 0x61a   : > { %1869 = vxpose.xlu1.b32.cont [3/16] %v3666_v41, 128 }
 0x61d   : > { %1477 = vxpose.xlu0.b32.cont [4/16] %v3663_v63, 128 }
 0x61e   : > { %1870 = vxpose.xlu1.b32.cont [4/16] %v3666_v41, 128 }
 0x621   : > { %1478 = vxpose.xlu0.b32.cont [5/16] %v3663_v63, 128 }
 0x622   : > { %1871 = vxpose.xlu1.b32.cont [5/16] %v3666_v41, 128 }
 0x625   : > { %1479 = vxpose.xlu0.b32.cont [6/16] %v3663_v63, 128 }
 0x626   : > { %1872 = vxpose.xlu1.b32.cont [6/16] %v3666_v41, 128 }
 0x629   : > { %1480 = vxpose.xlu0.b32.cont [7/16] %v3663_v63, 128 }
 0x62a   : > { %1873 = vxpose.xlu1.b32.cont [7/16] %v3666_v41, 128 }
 0x62d   : > { %1481 = vxpose.xlu0.b32.cont [8/16] %v3663_v63, 128 }
 0x62e   : > { %1874 = vxpose.xlu1.b32.cont [8/16] %v3666_v41, 128 }
 0x631   : > { %1482 = vxpose.xlu0.b32.cont [9/16] %v3663_v63, 128 }
 0x632   : > { %1875 = vxpose.xlu1.b32.cont [9/16] %v3666_v41, 128 }
 0x635   : > { %1483 = vxpose.xlu0.b32.cont [10/16] %v3663_v63, 128 }
 0x636   : > { %1876 = vxpose.xlu1.b32.cont [10/16] %v3666_v41, 128 }
 0x639   : > { %1484 = vxpose.xlu0.b32.cont [11/16] %v3663_v63, 128 }
 0x63a   : > { %1877 = vxpose.xlu1.b32.cont [11/16] %v3666_v41, 128 }
 0x63d   : > { %1485 = vxpose.xlu0.b32.cont [12/16] %v3663_v63, 128 }
 0x63e   : > { %1878 = vxpose.xlu1.b32.cont [12/16] %v3666_v41, 128 }
 0x641   : > { %1486 = vxpose.xlu0.b32.cont [13/16] %v3663_v63, 128 }
 0x642   : > { %1879 = vxpose.xlu1.b32.cont [13/16] %v3666_v41, 128 }
 0x645   : > { %1487 = vxpose.xlu0.b32.cont [14/16] %v3663_v63, 128 }
 0x646   : > { %1880 = vxpose.xlu1.b32.cont [14/16] %v3666_v41, 128 }
 0x649   : > { %1488 = vxpose.xlu0.b32.cont [15/16] %v3663_v63, 128 }
 0x64a   : > { %1881 = vxpose.xlu1.b32.cont [15/16] %v3666_v41, 128 }
 0x64d   : > { %1489 = vxpose.xlu0.b32.end [16/16] %v3663_v63, 128 }
 0x64e   : > { %1882 = vxpose.xlu1.b32.end [16/16] %v3666_v41, 128 }
 0x676   : > { %2714 = vset.pattern.permute.xlu0 %v2777_v0 }
 0x691   : > { %v3701_v1 = vpop.trf.xlu0 }
 0x692   : > { %v3703_v3 = vpop.trf.xlu1  ;;  %vm1506_vm0 = vcmp.lt.f32.partialorder %v3663_v63, %v3701_v1  ;;  %vm1522_vm8 = vcmp.eq.f32.partialorder %v3663_v63, %v3701_v1 }
 0x693   : > { %vm1899_vm13 = vcmp.lt.f32.partialorder %v3666_v41, %v3703_v3  ;;  %vm1915_vm9 = vcmp.eq.f32.partialorder %v3666_v41, %v3703_v3  ;;  %vm1538_vm4 = vmand %vm1522_vm8, %vm228_vm1 }
 0x694   : > { %vm1931_vm2 = vmand %vm1915_vm9, %vm228_vm1  ;;  %vm4407_vm9 = vcmp.lt.s32.totalorder %v2907_v16, %v4406_v29 }
 0x695   : > { %v3719_v4 = vpop.trf.xlu0  ;;  %vm1554_vm11 = vmor %vm1506_vm0, %vm1538_vm4 }
 0x696   : > { %v3721_v5 = vpop.trf.xlu1  ;;  %v1570_v6 = vsel %vm1554_vm11, 1, %v2777_v0  ;;  %vm1947_vm15 = vmor %vm1899_vm13, %vm1931_vm2  ;;  %vm1507_vm10 = vcmp.lt.f32.partialorder %v3663_v63, %v3719_v4  ;;  %vm1523_vm6 = vcmp.eq.f32.partialorder %v3663_v63, %v3719_v4 }
 0x697   : > { %vm1916_vm12 = vcmp.eq.f32.partialorder %v3666_v41, %v3721_v5  ;;  %v1587_v11 = vshrl.u32 %v1570_v6, 16  ;;  %v1586_v10 = vand.u32 65535, %v1570_v6  ;;  %vm1539_vm1 = vmand %vm1523_vm6, %vm229_vm7  ;;  %v1963_v44 = vsel %vm1947_vm15, 1, %v2777_v0 }
 0x698   : > { %v1980_v45 = vshrl.u32 %v1963_v44, 16  ;;  %v1979_v8 = vand.u32 65535, %v1963_v44  ;;  %vm1555_vm14 = vmor %vm1507_vm10, %vm1539_vm1  ;;  %vm1900_vm5 = vcmp.lt.f32.partialorder %v3666_v41, %v3721_v5  ;;  %vm4411_vm15 = vcmp.lt.s32.totalorder %v2907_v16, %v4410_v50 }
 0x699   : > { %v3734_v51 = vpop.trf.xlu0  ;;  %v1589_v38 = vcvt.s32.f32 %v1587_v11  ;;  %v1588_v21 = vcvt.s32.f32 %v1586_v10  ;;  %vm1932_vm3 = vmand %vm1916_vm12, %vm229_vm7  ;;  %v1571_v54 = vsel %vm1555_vm14, 1, %v2777_v0 }
 0x69a   : > { %v3741_v28 = vpop.trf.xlu1  ;;  %vm1524_vm0 = vcmp.eq.f32.partialorder %v3663_v63, %v3734_v51  ;;  %v1982_v25 = vcvt.s32.f32 %v1980_v45  ;;  %v1981_v58 = vcvt.s32.f32 %v1979_v8  ;;  %v1599_v59 = vshrl.u32 %v1571_v54, 16  ;;  %vm3748_vm8 = vmor %vm1900_vm5, %vm1932_vm3 }
 0x69b   : > { %1592 = vadd.xlane.f32.xlu0 %v1589_v38  ;;  %1590 = vadd.xlane.f32.xlu1 %v1588_v21  ;;  %vm3761_vm4 = vmand %vm1524_vm0, %vm4407_vm9  ;;  %v1598_v61 = vand.u32 65535, %v1571_v54  ;;  %v1964_v27 = vsel %vm3748_vm8, 1, %v2777_v0 }
 0x69c   : > { %vm4412_vm6 = vmmov %vm4411_vm15  ;;  %v1601_v35 = vcvt.s32.f32 %v1599_v59  ;;  %v1992_v62 = vshrl.u32 %v1964_v27, 16  ;;  %v1991_v52 = vand.u32 65535, %v1964_v27 }
 0x69d   : > { %v3746_v24 = vpop.trf.xlu0  ;;  %v1600_v39 = vcvt.s32.f32 %v1598_v61 }
 0x69e   : > { %v3752_v17 = vpop.trf.xlu1  ;;  %vm1509_vm7 = vcmp.lt.f32.partialorder %v3663_v63, %v3746_v24  ;;  %vm1525_vm13 = vcmp.eq.f32.partialorder %v3663_v63, %v3746_v24  ;;  %v1994_v42 = vcvt.s32.f32 %v1992_v62  ;;  %v1993_v19 = vcvt.s32.f32 %v1991_v52  ;;  %v4426_v62 = vld [vmem:[#allocation9_spill] sm:$0xff] }
 0x69f   : > { %1985 = vadd.xlane.f32.xlu1 %v1982_v25  ;;  %1983 = vadd.xlane.f32.xlu0 %v1981_v58  ;;  %vm1902_vm2 = vcmp.lt.f32.partialorder %v3666_v41, %v3752_v17  ;;  %vm1918_vm11 = vcmp.eq.f32.partialorder %v3666_v41, %v3752_v17  ;;  %vm1541_vm10 = vmand %vm1525_vm13, %vm4411_vm15  ;;  %vm1508_vm13 = vcmp.lt.f32.partialorder %v3663_v63, %v3734_v51  ;;  %v4423_v58 = vld [vmem:[#allocation6_spill] sm:$0xff] }
 0x6a0   : > { %vm1934_vm12 = vmand %vm1918_vm11, %vm4412_vm6 }
 0x6a1   : > { %v3775_v40 = vpop.trf.xlu0  ;;  %vm1557_vm1 = vmor %vm1509_vm7, %vm1541_vm10  ;;  %vm4414_vm7 = vcmp.lt.s32.totalorder %v2907_v16, %v4413_v34 }
 0x6a2   : > { %v3777_v37 = vpop.trf.xlu1  ;;  %v3780_v36 = vsel %vm1557_vm1, 1, %v2777_v0  ;;  %vm1950_vm14 = vmor %vm1902_vm2, %vm1934_vm12  ;;  %vm1510_vm5 = vcmp.lt.f32.partialorder %v3663_v63, %v3775_v40  ;;  %vm1526_vm3 = vcmp.eq.f32.partialorder %v3663_v63, %v3775_v40  ;;  %vm1917_vm12 = vcmp.eq.f32.partialorder %v3666_v41, %v3741_v28 }
 0x6a3   : > { %1604 = vadd.xlane.f32.xlu0 %v1601_v35  ;;  %vm1919_vm0 = vcmp.eq.f32.partialorder %v3666_v41, %v3777_v37  ;;  %v1622_v30 = vand.u32 65535, %v3780_v36  ;;  %v3793_v20 = vsel %vm1950_vm14, 1, %v2777_v0  ;;  %vm1542_vm8 = vmand %vm1526_vm3, %vm4414_vm7  ;;  %vm1903_vm9 = vcmp.lt.f32.partialorder %v3666_v41, %v3777_v37 }
 0x6a4   : > { %vm4415_vm2 = vmmov %vm4414_vm7  ;;  %v2015_v9 = vand.u32 65535, %v3793_v20  ;;  %vm4418_vm7 = vcmp.lt.s32.totalorder %v2907_v16, %v4406_v29 }
 0x6a5   : > { %vm1935_vm11 = vmand %vm1919_vm0, %vm4415_vm2  ;;  %v3805_v47 = vpop.trf.xlu0  ;;  %v1624_v56 = vcvt.s32.f32 %v1622_v30  ;;  %vm1901_vm0 = vcmp.lt.f32.partialorder %v3666_v41, %v3741_v28  ;;  %v1623_v30 = vshrl.u32 %v3780_v36, 16 }
 0x6a6   : > { %vm1558_vm15 = vmor %vm1510_vm5, %vm1542_vm8  ;;  %vm1527_vm10 = vcmp.eq.f32.partialorder %v3663_v63, %v3805_v47  ;;  %v3813_v23 = vpop.trf.xlu1  ;;  %vm1511_vm14 = vcmp.lt.f32.partialorder %v3663_v63, %v3805_v47  ;;  %vm4417_vm5 = vcmp.lt.s32.totalorder %v2907_v16, %v4416_v48  ;;  %v2017_v33 = vcvt.s32.f32 %v2015_v9 }
 0x6a7   : > { %v3816_v60 = vsel %vm1558_vm15, 1, %v2777_v0  ;;  %vm1556_vm6 = vmor %vm1508_vm13, %vm3761_vm4  ;;  %1626 = vadd.xlane.f32.xlu1 %v1624_v56  ;;  %1602 = vadd.xlane.f32.xlu0 %v1600_v39  ;;  %vm1920_vm4 = vcmp.eq.f32.partialorder %v3666_v41, %v3813_v23  ;;  %v2016_v9 = vshrl.u32 %v3793_v20, 16  ;;  %v1625_v36 = vcvt.s32.f32 %v1623_v30 }
 0x6a8   : > { %vm1951_vm1 = vmor %vm1903_vm9, %vm1935_vm11  ;;  %v1634_v26 = vand.u32 65535, %v3816_v60  ;;  %v1572_v13 = vsel %vm1556_vm6, 1, %v2777_v0  ;;  %vm1904_vm9 = vcmp.lt.f32.partialorder %v3666_v41, %v3813_v23 }
 0x6a9   : > { %vm1543_vm3 = vmand %vm1527_vm10, %vm4417_vm5  ;;  %v3838_v32 = vpop.trf.xlu0  ;;  %v3842_v15 = vsel %vm1951_vm1, 1, %v2777_v0  ;;  %v1611_v7 = vshrl.u32 %v1572_v13, 16  ;;  %vm4421_vm1 = vcmp.lt.s32.totalorder %v2907_v16, %v4420_v22  ;;  %v1610_v43 = vand.u32 65535, %v1572_v13 }
 0x6aa   : > { %vm1933_vm8 = vmand %vm1917_vm12, %vm4418_vm7  ;;  %vm1528_vm15 = vcmp.eq.f32.partialorder %v3663_v63, %v3838_v32  ;;  %v1636_v18 = vcvt.s32.f32 %v1634_v26  ;;  %v2027_v55 = vand.u32 65535, %v3842_v15  ;;  %v3855_v49 = vpop.trf.xlu1  ;;  %vm1512_vm12 = vcmp.lt.f32.partialorder %v3663_v63, %v3838_v32 }
 0x6ab   : > { %1997 = vadd.xlane.f32.xlu0 %v1994_v42  ;;  %2019 = vadd.xlane.f32.xlu1 %v2017_v33  ;;  %vm1559_vm13 = vmor %vm1511_vm14, %vm1543_vm3  ;;  %v1613_v53 = vcvt.s32.f32 %v1611_v7  ;;  %v1612_v21 = vcvt.s32.f32 %v1610_v43  ;;  %v2018_v20 = vcvt.s32.f32 %v2016_v9  ;;  %v1635_v13 = vshrl.u32 %v3816_v60, 16 }
 0x6ac   : > { %vm4419_vm2 = vmmov %vm4417_vm5  ;;  %v3858_v14 = vsel %vm1559_vm13, 1, %v2777_v0  ;;  %vm1921_vm5 = vcmp.eq.f32.partialorder %v3666_v41, %v3855_v49  ;;  %v2029_v6 = vcvt.s32.f32 %v2027_v55  ;;  %v4429_v55 = vld [vmem:[#allocation8_spill] sm:$0xff]  ;;  %v2028_v22 = vshrl.u32 %v3842_v15, 16 }
 0x6ad   : > { %vm1936_vm11 = vmand %vm1920_vm4, %vm4419_vm2  ;;  %v1646_v11 = vand.u32 65535, %v3858_v14  ;;  %v3869_v10 = vpop.trf.xlu0  ;;  %vm1905_vm4 = vcmp.lt.f32.partialorder %v3666_v41, %v3855_v49  ;;  %vm4424_vm2 = vcmp.lt.s32.totalorder %v2907_v16, %v4423_v58  ;;  %v1637_v60 = vcvt.s32.f32 %v1635_v13  ;;  %v4432_v58 = vld [vmem:[#allocation11_spill] sm:$0xff] }
 0x6ae   : > { %vm1949_vm10 = vmor %vm1901_vm0, %vm1933_vm8  ;;  %vm1529_vm8 = vcmp.eq.f32.partialorder %v3663_v63, %v3869_v10  ;;  %v3882_v54 = vpop.trf.xlu1  ;;  %v2030_v15 = vcvt.s32.f32 %v2028_v22 }
 0x6af   : > { %1995 = vadd.xlane.f32.xlu0 %v1993_v19  ;;  %1638 = vadd.xlane.f32.xlu1 %v1636_v18  ;;  %vm1952_vm6 = vmor %vm1904_vm9, %vm1936_vm11  ;;  %v1965_v46 = vsel %vm1949_vm10, 1, %v2777_v0  ;;  %v1648_v45 = vcvt.s32.f32 %v1646_v11  ;;  %vm1513_vm9 = vcmp.lt.f32.partialorder %v3663_v63, %v3869_v10 }
 0x6b0   : > { %vm1544_vm14 = vmand %vm1528_vm15, %vm4421_vm1  ;;  %v3872_v44 = vsel %vm1952_vm6, 1, %v2777_v0  ;;  %v2004_v38 = vshrl.u32 %v1965_v46, 16  ;;  %v2003_v59 = vand.u32 65535, %v1965_v46  ;;  %vm1922_vm15 = vcmp.eq.f32.partialorder %v3666_v41, %v3882_v54 }
 0x6b1   : > { %vm1560_vm3 = vmor %vm1512_vm12, %vm1544_vm14  ;;  %v2039_v8 = vand.u32 65535, %v3872_v44  ;;  %v3895_v50 = vpop.trf.xlu0  ;;  %vm1906_vm6 = vcmp.lt.f32.partialorder %v3666_v41, %v3882_v54 }
 0x6b2   : > { %vm4422_vm0 = vmmov %vm4421_vm1  ;;  %v3885_v25 = vsel %vm1560_vm3, 1, %v2777_v0  ;;  %v2006_v31 = vcvt.s32.f32 %v2004_v38  ;;  %v2005_v61 = vcvt.s32.f32 %v2003_v59  ;;  %vm1530_vm14 = vcmp.eq.f32.partialorder %v3663_v63, %v3895_v50  ;;  %v3909_v56 = vpop.trf.xlu1 }
 0x6b3   : > { %1616 = vadd.xlane.f32.xlu0 %v1613_v53  ;;  %2031 = vadd.xlane.f32.xlu1 %v2029_v6  ;;  %vm1937_vm7 = vmand %vm1921_vm5, %vm4422_vm0  ;;  %v2041_v29 = vcvt.s32.f32 %v2039_v8  ;;  %v1658_v12 = vand.u32 65535, %v3885_v25  ;;  %vm1514_vm3 = vcmp.lt.f32.partialorder %v3663_v63, %v3895_v50  ;;  %v1647_v38 = vshrl.u32 %v3858_v14, 16 }
 0x6b4   : > { %vm1953_vm13 = vmor %vm1905_vm4, %vm1937_vm7  ;;  %vm4427_vm4 = vcmp.lt.s32.totalorder %v2907_v16, %v4426_v62  ;;  %vm1923_vm7 = vcmp.eq.f32.partialorder %v3666_v41, %v3909_v56  ;;  %v2040_v59 = vshrl.u32 %v3872_v44, 16  ;;  %v1659_v30 = vshrl.u32 %v3885_v25, 16 }
 0x6b5   : > { %vm1545_vm11 = vmand %vm1529_vm8, %vm4424_vm2  ;;  %v3898_v35 = vsel %vm1953_vm13, 1, %v2777_v0  ;;  %v1660_v27 = vcvt.s32.f32 %v1658_v12  ;;  %v3923_v42 = vpop.trf.xlu0  ;;  %vm1907_vm13 = vcmp.lt.f32.partialorder %v3666_v41, %v3909_v56  ;;  %v1649_v14 = vcvt.s32.f32 %v1647_v38 }
 0x6b6   : > { %vm1561_vm10 = vmor %vm1513_vm9, %vm1545_vm11  ;;  %v2051_v34 = vand.u32 65535, %v3898_v35  ;;  %vm1531_vm11 = vcmp.eq.f32.partialorder %v3663_v63, %v3923_v42  ;;  %v3937_v18 = vpop.trf.xlu1  ;;  %v2042_v44 = vcvt.s32.f32 %v2040_v59  ;;  %v1661_v25 = vcvt.s32.f32 %v1659_v30 }
 0x6b7   : > { %1614 = vadd.xlane.f32.xlu0 %v1612_v21  ;;  %1650 = vadd.xlane.f32.xlu1 %v1648_v45  ;;  %vm4425_vm12 = vmmov %vm4424_vm2  ;;  %v3912_v39 = vsel %vm1561_vm10, 1, %v2777_v0  ;;  %vm1515_vm10 = vcmp.lt.f32.partialorder %v3663_v63, %v3923_v42 }
 0x6b8   : > { %vm1938_vm1 = vmand %vm1922_vm15, %vm4425_vm12  ;;  %v2053_v48 = vcvt.s32.f32 %v2051_v34  ;;  %v1670_v52 = vand.u32 65535, %v3912_v39 }
 0x6b9   : > { %vm1954_vm5 = vmor %vm1906_vm6, %vm1938_vm1  ;;  %vm4430_vm6 = vcmp.lt.s32.totalorder %v2907_v16, %v4429_v55  ;;  %vm1924_vm1 = vcmp.eq.f32.partialorder %v3666_v41, %v3937_v18  ;;  %v3951_v53 = vpop.trf.xlu0  ;;  %v1671_v55 = vshrl.u32 %v3912_v39, 16 }
 0x6ba   : > { %vm1546_vm0 = vmand %vm1530_vm14, %vm4427_vm4  ;;  %v3926_v33 = vsel %vm1954_vm5, 1, %v2777_v0  ;;  %v1672_v26 = vcvt.s32.f32 %v1670_v52  ;;  %vm1908_vm5 = vcmp.lt.f32.partialorder %v3666_v41, %v3937_v18  ;;  %v3965_v45 = vpop.trf.xlu1 }
 0x6bb   : > { %2009 = vadd.xlane.f32.xlu0 %v2006_v31  ;;  %2043 = vadd.xlane.f32.xlu1 %v2041_v29  ;;  %vm1562_vm8 = vmor %vm1514_vm3, %vm1546_vm0  ;;  %v2063_v19 = vand.u32 65535, %v3926_v33  ;;  %vm1532_vm0 = vcmp.eq.f32.partialorder %v3663_v63, %v3951_v53  ;;  %v1673_v39 = vcvt.s32.f32 %v1671_v55 }
 0x6bc   : > { %vm4428_vm9 = vmmov %vm4427_vm4  ;;  %v3940_v7 = vsel %vm1562_vm8, 1, %v2777_v0  ;;  %vm1516_vm8 = vcmp.lt.f32.partialorder %v3663_v63, %v3951_v53 }
 0x6bd   : > { %vm1939_vm2 = vmand %vm1923_vm7, %vm4428_vm9  ;;  %v2065_v43 = vcvt.s32.f32 %v2063_v19  ;;  %v1682_v46 = vand.u32 65535, %v3940_v7  ;;  %v3979_v12 = vpop.trf.xlu0 }
 0x6be   : > { %vm1955_vm15 = vmor %vm1907_vm13, %vm1939_vm2  ;;  %vm4433_vm13 = vcmp.lt.s32.totalorder %v2907_v16, %v4432_v58  ;;  %vm1925_vm2 = vcmp.eq.f32.partialorder %v3666_v41, %v3965_v45  ;;  %v3993_v62 = vpop.trf.xlu1 }
 0x6bf   : > { %2007 = vadd.xlane.f32.xlu0 %v2005_v61  ;;  %1662 = vadd.xlane.f32.xlu1 %v1660_v27  ;;  %vm1547_vm12 = vmand %vm1531_vm11, %vm4430_vm6  ;;  %v3954_v6 = vsel %vm1955_vm15, 1, %v2777_v0  ;;  %v1684_v11 = vcvt.s32.f32 %v1682_v46  ;;  %vm1909_vm15 = vcmp.lt.f32.partialorder %v3666_v41, %v3965_v45  ;;  %v4438_v46 = vld [vmem:[#allocation13_spill] sm:$0xff] }
 0x6c0   : > { %vm1563_vm14 = vmor %vm1515_vm10, %vm1547_vm12  ;;  %v2075_v21 = vand.u32 65535, %v3954_v6  ;;  %vm1533_vm12 = vcmp.eq.f32.partialorder %v3663_v63, %v3979_v12  ;;  %v2076_v30 = vshrl.u32 %v3954_v6, 16 }
 0x6c1   : > { %vm4431_vm3 = vmmov %vm4430_vm6  ;;  %v3968_v8 = vsel %vm1563_vm14, 1, %v2777_v0  ;;  %vm1517_vm14 = vcmp.lt.f32.partialorder %v3663_v63, %v3979_v12 }
 0x6c2   : > { %vm1940_vm4 = vmand %vm1924_vm1, %vm4431_vm3  ;;  %v2077_v31 = vcvt.s32.f32 %v2075_v21  ;;  %v1694_v29 = vand.u32 65535, %v3968_v8  ;;  %v2078_v6 = vcvt.s32.f32 %v2076_v30 }
 0x6c3   : > { %1628 = vadd.xlane.f32.xlu0 %v1625_v36  ;;  %2055 = vadd.xlane.f32.xlu1 %v2053_v48  ;;  %vm1956_vm7 = vmor %vm1908_vm5, %vm1940_vm4  ;;  %v4435_v36 = vld [vmem:[#allocation10_spill] sm:$0xff]  ;;  %v2052_v48 = vshrl.u32 %v3898_v35, 16  ;;  %vm1926_vm4 = vcmp.eq.f32.partialorder %v3666_v41, %v3993_v62 }
 0x6c4   : > { %vm1548_vm9 = vmand %vm1532_vm0, %vm4433_vm13  ;;  %v3982_v61 = vsel %vm1956_vm7, 1, %v2777_v0  ;;  %v1696_v27 = vcvt.s32.f32 %v1694_v29  ;;  %vm4436_vm5 = vcmp.lt.s32.totalorder %v2907_v16, %v4435_v36  ;;  %vm1910_vm7 = vcmp.lt.f32.partialorder %v3666_v41, %v3993_v62 }
 0x6c5   : > { %vm1564_vm11 = vmor %vm1516_vm8, %vm1548_vm9  ;;  %v2087_v34 = vand.u32 65535, %v3982_v61  ;;  %v2054_v35 = vcvt.s32.f32 %v2052_v48 }
 0x6c6   : > { %vm4434_vm10 = vmmov %vm4433_vm13  ;;  %v3996_v9 = vsel %vm1564_vm11, 1, %v2777_v0 }
 0x6c7   : > { %2021 = vadd.xlane.f32.xlu0 %v2018_v20  ;;  %1674 = vadd.xlane.f32.xlu1 %v1672_v26  ;;  %vm1941_vm6 = vmand %vm1925_vm2, %vm4434_vm10  ;;  %v2089_v52 = vcvt.s32.f32 %v2087_v34  ;;  %v1706_v20 = vand.u32 65535, %v3996_v9  ;;  %v4007_v26 = vpop.trf.xlu0 }
 0x6c8   : > { %vm1957_vm1 = vmor %vm1909_vm15, %vm1941_vm6  ;;  %vm1534_vm9 = vcmp.eq.f32.partialorder %v3663_v63, %v4007_v26  ;;  %vm1518_vm11 = vcmp.lt.f32.partialorder %v3663_v63, %v4007_v26  ;;  %vm4439_vm15 = vcmp.lt.s32.totalorder %v2907_v16, %v4438_v46  ;;  %v2088_v46 = vshrl.u32 %v3982_v61, 16 }
 0x6c9   : > { %vm1549_vm3 = vmand %vm1533_vm12, %vm4436_vm5  ;;  %v4010_v13 = vsel %vm1957_vm1, 1, %v2777_v0  ;;  %v1708_v19 = vcvt.s32.f32 %v1706_v20  ;;  %v1695_v20 = vshrl.u32 %v3968_v8, 16 }
 0x6ca   : > { %vm1565_vm0 = vmor %vm1517_vm14, %vm1549_vm3  ;;  %v2099_v22 = vand.u32 65535, %v4010_v13  ;;  %v2090_v61 = vcvt.s32.f32 %v2088_v46 }
 0x6cb   : > { %1640 = vadd.xlane.f32.xlu0 %v1637_v60  ;;  %2067 = vadd.xlane.f32.xlu1 %v2065_v43  ;;  %vm4437_vm8 = vmmov %vm4436_vm5  ;;  %v4021_v60 = vpop.trf.xlu1  ;;  %v4024_v43 = vsel %vm1565_vm0, 1, %v2777_v0  ;;  %v4035_v21 = vpop.trf.xlu0  ;;  %v1697_v8 = vcvt.s32.f32 %v1695_v20 }
 0x6cc   : > { %vm1942_vm13 = vmand %vm1926_vm4, %vm4437_vm8  ;;  %vm1927_vm6 = vcmp.eq.f32.partialorder %v3666_v41, %v4021_v60  ;;  %v1718_v38 = vand.u32 65535, %v4024_v43  ;;  %vm1911_vm1 = vcmp.lt.f32.partialorder %v3666_v41, %v4021_v60  ;;  %vm1535_vm3 = vcmp.eq.f32.partialorder %v3663_v63, %v4035_v21 }
 0x6cd   : > { %vm1958_vm2 = vmor %vm1910_vm7, %vm1942_vm13  ;;  %vm1519_vm0 = vcmp.lt.f32.partialorder %v3663_v63, %v4035_v21  ;;  %v1719_v20 = vshrl.u32 %v4024_v43, 16 }
 0x6ce   : > { %vm1550_vm10 = vmand %vm1534_vm9, %vm4439_vm15  ;;  %v4038_v58 = vsel %vm1958_vm2, 1, %v2777_v0  ;;  %v1720_v59 = vcvt.s32.f32 %v1718_v38 }
 0x6cf   : > { %2033 = vadd.xlane.f32.xlu0 %v2030_v15  ;;  %1686 = vadd.xlane.f32.xlu1 %v1684_v11  ;;  %v2064_v15 = vshrl.u32 %v3926_v33, 16  ;;  %v2101_v11 = vcvt.s32.f32 %v2099_v22  ;;  %vm1566_vm12 = vmor %vm1518_vm11, %vm1550_vm10  ;;  %v4049_v29 = vpop.trf.xlu1  ;;  %v4063_v48 = vpop.trf.xlu0  ;;  %v4444_v22 = vld [vmem:[#allocation15_spill] sm:$0xff] }
 0x6d0   : > { %vm4440_vm14 = vmmov %vm4439_vm15  ;;  %vm1928_vm13 = vcmp.eq.f32.partialorder %v3666_v41, %v4049_v29  ;;  %vm1912_vm2 = vcmp.lt.f32.partialorder %v3666_v41, %v4049_v29  ;;  %vm1536_vm10 = vcmp.eq.f32.partialorder %v3663_v63, %v4063_v48 }
 0x6d1   : > { %vm1943_vm5 = vmand %vm1927_vm6, %vm4440_vm14  ;;  %v2066_v33 = vcvt.s32.f32 %v2064_v15 }
 0x6d2   : > { %vm1959_vm4 = vmor %vm1911_vm1, %vm1943_vm5  ;;  %vm4445_vm1 = vcmp.lt.s32.totalorder %v2907_v16, %v4444_v22  ;;  %v1721_v22 = vcvt.s32.f32 %v1719_v20 }
 0x6d3   : > { %1652 = vadd.xlane.f32.xlu0 %v1649_v14  ;;  %2079 = vadd.xlane.f32.xlu1 %v2077_v31  ;;  %v1683_v14 = vshrl.u32 %v3940_v7, 16  ;;  %v2111_v31 = vand.u32 65535, %v4038_v58  ;;  %vm1552_vm14 = vmand %vm1536_vm10, %vm4445_vm1 }
 0x6d5   : > { %v1685_v7 = vcvt.s32.f32 %v1683_v14  ;;  %v2113_v34 = vcvt.s32.f32 %v2111_v31 }
 0x6d7   : > { %2045 = vadd.xlane.f32.xlu0 %v2042_v44  ;;  %1698 = vadd.xlane.f32.xlu1 %v1696_v27  ;;  %v4052_v44 = vsel %vm1566_vm12, 1, %v2777_v0  ;;  %v4441_v27 = vld [vmem:[#allocation12_spill] sm:$0xff]  ;;  %vm1520_vm12 = vcmp.lt.f32.partialorder %v3663_v63, %v4063_v48 }
 0x6d8   : > { %vm4442_vm7 = vcmp.lt.s32.totalorder %v2907_v16, %v4441_v27  ;;  %v1730_v36 = vand.u32 65535, %v4052_v44  ;;  %v4447_v27 = vld [vmem:[#allocation14_spill] sm:$0xff] }
 0x6d9   : > { %vm1551_vm8 = vmand %vm1535_vm3, %vm4442_vm7 }
 0x6da   : > { %vm1567_vm9 = vmor %vm1519_vm0, %vm1551_vm8 }
 0x6db   : > { %1664 = vadd.xlane.f32.xlu0 %v1661_v25  ;;  %2091 = vadd.xlane.f32.xlu1 %v2089_v52  ;;  %v4066_v25 = vsel %vm1959_vm4, 1, %v2777_v0  ;;  %vm4443_vm11 = vmmov %vm4442_vm7  ;;  %v1732_v52 = vcvt.s32.f32 %v1730_v36  ;;  %v1583_v55 = vsel %vm1567_vm9, 1, %v2777_v0 }
 0x6dc   : > { %vm1944_vm15 = vmand %vm1928_vm13, %vm4443_vm11  ;;  %v2124_v43 = vshrl.u32 %v4066_v25, 16 }
 0x6dd   : > { %vm1960_vm6 = vmor %vm1912_vm2, %vm1944_vm15  ;;  %vm4448_vm2 = vcmp.lt.s32.totalorder %v2907_v16, %v4447_v27 }
 0x6de   : > { %v1976_v38 = vsel %vm1960_vm6, 1, %v2777_v0  ;;  %vm1568_vm3 = vmor %vm1520_vm12, %vm1552_vm14 }
 0x6df   : > { %2057 = vadd.xlane.f32.xlu0 %v2054_v35  ;;  %1710 = vadd.xlane.f32.xlu1 %v1708_v19  ;;  %v2123_v35 = vand.u32 65535, %v4066_v25  ;;  %v4077_v19 = vpop.trf.xlu1  ;;  %vm4446_vm0 = vmmov %vm4445_vm1  ;;  %v2135_v14 = vand.u32 65535, %v1976_v38  ;;  %v1584_v31 = vsel %vm1568_vm3, 1, %v2777_v0 }
 0x6e0   : > { %vm1929_vm5 = vcmp.eq.f32.partialorder %v3666_v41, %v4077_v19  ;;  %vm1913_vm4 = vcmp.lt.f32.partialorder %v3666_v41, %v4077_v19  ;;  %v1754_v36 = vand.u32 65535, %v1584_v31  ;;  %vm4449_vm12 = vmmov %vm4448_vm2 }
 0x6e1   : > { %v2125_v15 = vcvt.s32.f32 %v2123_v35  ;;  %vm1945_vm7 = vmand %vm1929_vm5, %vm4446_vm0 }
 0x6e2   : > { %vm1961_vm13 = vmor %vm1913_vm4, %vm1945_vm7 }
 0x6e3   : > { %1676 = vadd.xlane.f32.xlu0 %v1673_v39  ;;  %2103 = vadd.xlane.f32.xlu1 %v2101_v11  ;;  %v1742_v39 = vand.u32 65535, %v1583_v55  ;;  %v4088_v11 = vpop.trf.xlu0 }
 0x6e4   : > { %vm1537_vm8 = vcmp.eq.f32.partialorder %v3663_v63, %v4088_v11  ;;  %vm1521_vm9 = vcmp.lt.f32.partialorder %v3663_v63, %v4088_v11 }
 0x6e5   : > { %vm1553_vm11 = vmand %vm1537_vm8, %vm4448_vm2 }
 0x6e6   : > { %vm1569_vm15 = vmor %vm1521_vm9, %vm1553_vm11 }
 0x6e7   : > { %2069 = vadd.xlane.f32.xlu0 %v2066_v33  ;;  %1722 = vadd.xlane.f32.xlu1 %v1720_v59  ;;  %v1744_v33 = vcvt.s32.f32 %v1742_v39  ;;  %v1707_v59 = vshrl.u32 %v3996_v9, 16  ;;  %v1977_v9 = vsel %vm1961_vm13, 1, %v2777_v0  ;;  %v1585_v63 = vsel %vm1569_vm15, 1, %v2777_v0 }
 0x6e8   : > { %v2147_v35 = vand.u32 65535, %v1977_v9 }
 0x6e9   : > { %v1709_v30 = vcvt.s32.f32 %v1707_v59  ;;  %v2126_v59 = vcvt.s32.f32 %v2124_v43 }
 0x6ea   : > { %v2149_v46 = vcvt.s32.f32 %v2147_v35 }
 0x6eb   : > { %1688 = vadd.xlane.f32.xlu0 %v1685_v7  ;;  %2115 = vadd.xlane.f32.xlu1 %v2113_v34  ;;  %v2137_v7 = vcvt.s32.f32 %v2135_v14  ;;  %v2100_v34 = vshrl.u32 %v4010_v13, 16  ;;  %v1766_v13 = vand.u32 65535, %v1585_v63  ;;  %v1743_v14 = vshrl.u32 %v1583_v55, 16 }
 0x6ec   : > { %v1767_v55 = vshrl.u32 %v1585_v63, 16 }
 0x6ed   : > { %v1768_v39 = vcvt.s32.f32 %v1766_v13 }
 0x6ef   : > { %2081 = vadd.xlane.f32.xlu0 %v2078_v6  ;;  %1734 = vadd.xlane.f32.xlu1 %v1732_v52  ;;  %v2102_v6 = vcvt.s32.f32 %v2100_v34  ;;  %v1756_v52 = vcvt.s32.f32 %v1754_v36  ;;  %v4112_v34 = vpop.trf.xlu1 }
 0x6f0   : > { %vm1930_vm10 = vcmp.eq.f32.partialorder %v3666_v41, %v4112_v34  ;;  %vm1914_vm6 = vcmp.lt.f32.partialorder %v3666_v41, %v4112_v34 }
 0x6f1   : > { %vm1946_vm1 = vmand %vm1930_vm10, %vm4449_vm12 }
 0x6f2   : > { %vm1962_vm14 = vmor %vm1914_vm6, %vm1946_vm1 }
 0x6f3   : > { %1700 = vadd.xlane.f32.xlu0 %v1697_v8  ;;  %2127 = vadd.xlane.f32.xlu1 %v2125_v15  ;;  %v2112_v8 = vshrl.u32 %v4038_v58, 16  ;;  %v1755_v58 = vshrl.u32 %v1584_v31, 16 }
 0x6f5   : > { %v2114_v15 = vcvt.s32.f32 %v2112_v8  ;;  %v1757_v25 = vcvt.s32.f32 %v1755_v58 }
 0x6f7   : > { %2093 = vadd.xlane.f32.xlu0 %v2090_v61  ;;  %1746 = vadd.xlane.f32.xlu1 %v1744_v33  ;;  %v1731_v61 = vshrl.u32 %v4052_v44, 16  ;;  %v2148_v44 = vshrl.u32 %v1977_v9, 16 }
 0x6f9   : > { %v1733_v33 = vcvt.s32.f32 %v1731_v61 }
 0x6fb   : > { %1712 = vadd.xlane.f32.xlu0 %v1709_v30  ;;  %2139 = vadd.xlane.f32.xlu1 %v2137_v7  ;;  %v1745_v30 = vcvt.s32.f32 %v1743_v14  ;;  %v2136_v7 = vshrl.u32 %v1976_v38, 16  ;;  %v2150_v38 = vcvt.s32.f32 %v2148_v44 }
 0x6fd   : > { %v2138_v36 = vcvt.s32.f32 %v2136_v7 }
 0x6ff   : > { %2105 = vadd.xlane.f32.xlu0 %v2102_v6  ;;  %1758 = vadd.xlane.f32.xlu1 %v1756_v52  ;;  %v1978_v6 = vsel %vm1962_vm14, 1, %v2777_v0  ;;  %v1769_v52 = vcvt.s32.f32 %v1767_v55 }
 0x700   : > { %v2160_v31 = vshrl.u32 %v1978_v6, 16  ;;  %v2159_v35 = vand.u32 65535, %v1978_v6 }
 0x702   : > { %v2162_v20 = vcvt.s32.f32 %v2160_v31  ;;  %v2161_v27 = vcvt.s32.f32 %v2159_v35 }
 0x703   : > { %1724 = vadd.xlane.f32.xlu0 %v1721_v22  ;;  %2151 = vadd.xlane.f32.xlu1 %v2149_v46 }
 0x707   : > { %2117 = vadd.xlane.f32.xlu0 %v2114_v15  ;;  %1770 = vadd.xlane.f32.xlu1 %v1768_v39 }
 0x70b   : > { %1736 = vadd.xlane.f32.xlu0 %v1733_v33 }
 0x70f   : > { %2129 = vadd.xlane.f32.xlu0 %v2126_v59 }
 0x713   : > { %1748 = vadd.xlane.f32.xlu0 %v1745_v30 }
 0x717   : > { %2141 = vadd.xlane.f32.xlu0 %v2138_v36 }
 0x71b   : > { %1760 = vadd.xlane.f32.xlu0 %v1757_v25 }
 0x71f   : > { %2153 = vadd.xlane.f32.xlu0 %v2150_v38 }
 0x723   : > { %1772 = vadd.xlane.f32.xlu0 %v1769_v52 }
 0x727   : > { %2165 = vadd.xlane.f32.xlu0 %v2162_v20 }
 0x728   : > { %v1593_v41 = vpop.xlane.xlu0 %1592  ;;  %v1591_v22 = vpop.xlane.xlu1 %1590 }
 0x729   : > { %v1595_v46 = vcvt.f32.s32 %v1593_v41  ;;  %v1594_v9 = vcvt.f32.s32 %v1591_v22 }
 0x72b   : > { %v1596_v8 = vshll.u32 %v1595_v46, 16  ;;  %2163 = vadd.xlane.f32.xlu0 %v2161_v27 }
 0x72c   : > { %v1984_v13 = vpop.xlane.xlu0 %1983  ;;  %v1986_v15 = vpop.xlane.xlu1 %1985 }
 0x72d   : > { %v1597_v63 = vadd.s32 %v1596_v8, %v1594_v9  ;;  %v1988_v39 = vcvt.f32.s32 %v1986_v15  ;;  %v1987_v61 = vcvt.f32.s32 %v1984_v13 }
 0x72f   : > { %v1989_v0 = vshll.u32 %v1988_v39, 16  ;;  %vm1778_vm5 = vcmp.eq.s32.totalorder %v1597_v63, %v2907_v16 }
 0x730   : > { %v1605_v33 = vpop.xlane.xlu0 %1604  ;;  %v2452_v44 = vsel %vm1778_vm5, 1.0, %v4368_v2 }
 0x731   : > { %v1990_v43 = vadd.s32 %v1989_v0, %v1987_v61  ;;  %v1607_v59 = vcvt.f32.s32 %v1605_v33  ;;  %v1826_v52 = vmul.f32 %v2452_v44, %v3701_v1 }
 0x733   : > { %v1608_v7 = vshll.u32 %v1607_v59, 16  ;;  %vm2171_vm4 = vcmp.eq.s32.totalorder %v1990_v43, %v2907_v16 }
 0x734   : > { %v1603_v14 = vpop.xlane.xlu0 %1602  ;;  %v1627_v30 = vpop.xlane.xlu1 %1626  ;;  %v2468_v8 = vsel %vm2171_vm4, 1.0, %v4368_v2 }
 0x735   : > { %v1606_v58 = vcvt.f32.s32 %v1603_v14 }
 0x737   : > { %v1609_v36 = vadd.s32 %v1608_v7, %v1606_v58 }
 0x738   : > { %v1998_v25 = vpop.xlane.xlu0 %1997  ;;  %v2020_v55 = vpop.xlane.xlu1 %2019 }
 0x739   : > { %vm1779_vm3 = vcmp.eq.s32.totalorder %v1609_v36, %v2907_v16  ;;  %v2000_v38 = vcvt.f32.s32 %v1998_v25 }
 0x73a   : > { %v2453_v6 = vsel %vm1779_vm3, 1.0, %v4368_v2 }
 0x73b   : > { %v1827_v31 = vmul.f32 %v2453_v6, %v3719_v4  ;;  %v2001_v22 = vshll.u32 %v2000_v38, 16  ;;  %v2219_v4 = vmul.f32 %v2468_v8, %v3703_v3 }
 0x73c   : > { %v1996_v20 = vpop.xlane.xlu0 %1995  ;;  %v4128_v35 = vpop.xlane.xlu1 %1638 }
 0x73d   : > { %v1842_v41 = vadd.f32 %v1827_v31, %v1826_v52  ;;  %v1999_v46 = vcvt.f32.s32 %v1996_v20 }
 0x73f   : > { %v2002_v27 = vadd.s32 %v2001_v22, %v1999_v46  ;;  %v1630_v46 = vcvt.f32.s32 %v1627_v30 }
 0x740   : > { %v1617_v9 = vpop.xlane.xlu0 %1616  ;;  %v4132_v13 = vpop.xlane.xlu1 %2031 }
 0x741   : > { %vm2172_vm0 = vcmp.eq.s32.totalorder %v2002_v27, %v2907_v16  ;;  %v1619_v15 = vcvt.f32.s32 %v1617_v9  ;;  %2263 = vperm.xlu0 %2714, %v4402_v57  }
 0x742   : > { %v2469_v1 = vsel %vm2172_vm0, 1.0, %v4368_v2 }
 0x743   : > { %v2220_v63 = vmul.f32 %v2469_v1, %v3721_v5  ;;  %v1620_v33 = vshll.u32 %v1619_v15, 16 }
 0x744   : > { %v1615_v39 = vpop.xlane.xlu0 %1614  ;;  %v4139_v61 = vpop.xlane.xlu1 %1650 }
 0x745   : > { %v2235_v0 = vadd.f32 %v2220_v63, %v2219_v4  ;;  %v1618_v43 = vcvt.f32.s32 %v1615_v39  ;;  %v2023_v4 = vcvt.f32.s32 %v2020_v55 }
 0x747   : > { %v1621_v59 = vadd.s32 %v1620_v33, %v1618_v43 }
 0x748   : > { %v2010_v14 = vpop.xlane.xlu0 %2009  ;;  %v4141_v7 = vpop.xlane.xlu1 %2043 }
 0x749   : > { %vm1780_vm7 = vcmp.eq.s32.totalorder %v1621_v59, %v2907_v16  ;;  %v2012_v58 = vcvt.f32.s32 %v2010_v14  ;;  %v1642_v14 = vcvt.f32.s32 %v4128_v35 }
 0x74a   : > { %v2454_v57 = vsel %vm1780_vm7, 1.0, %v4368_v2 }
 0x74b   : > { %v1828_v36 = vmul.f32 %v2454_v57, %v3734_v51  ;;  %v2013_v25 = vshll.u32 %v2012_v58, 16 }
 0x74c   : > { %v2008_v3 = vpop.xlane.xlu0 %2007  ;;  %v4146_v44 = vpop.xlane.xlu1 %1662 }
 0x74d   : > { %v1843_v5 = vadd.f32 %v1842_v41, %v1828_v36  ;;  %v2011_v38 = vcvt.f32.s32 %v2008_v3 }
 0x74f   : > { %v2014_v6 = vadd.s32 %v2013_v25, %v2011_v38 }
 0x750   : > { %v1629_v52 = vpop.xlane.xlu0 %1628  ;;  %v4148_v31 = vpop.xlane.xlu1 %2055 }
 0x751   : > { %vm2173_vm8 = vcmp.eq.s32.totalorder %v2014_v6, %v2907_v16  ;;  %v1631_v20 = vcvt.f32.s32 %v1629_v52  ;;  %v2035_v6 = vcvt.f32.s32 %v4132_v13 }
 0x752   : > { %v2470_v22 = vsel %vm2173_vm8, 1.0, %v4368_v2 }
 0x753   : > { %v2221_v27 = vmul.f32 %v2470_v22, %v3741_v28  ;;  %v1632_v8 = vshll.u32 %v1631_v20, 16 }
 0x754   : > { %v2022_v51 = vpop.xlane.xlu0 %2021  ;;  %v4153_v9 = vpop.xlane.xlu1 %1674 }
 0x755   : > { %v2236_v15 = vadd.f32 %v2235_v0, %v2221_v27  ;;  %v1633_v41 = vadd.s32 %v1632_v8, %v1630_v46  ;;  %v2024_v1 = vcvt.f32.s32 %v2022_v51  ;;  %v1654_v8 = vcvt.f32.s32 %v4139_v61 }
 0x757   : > { %vm1781_vm13 = vcmp.eq.s32.totalorder %v1633_v41, %v2907_v16  ;;  %v2025_v63 = vshll.u32 %v2024_v1, 16 }
 0x758   : > { %v2455_v39 = vsel %vm1781_vm13, 1.0, %v4368_v2  ;;  %v1641_v33 = vpop.xlane.xlu0 %1640  ;;  %v4157_v43 = vpop.xlane.xlu1 %2067 }
 0x759   : > { %v1829_v30 = vmul.f32 %v2455_v39, %v3746_v24  ;;  %v2026_v59 = vadd.s32 %v2025_v63, %v2023_v4  ;;  %v1643_v28 = vcvt.f32.s32 %v1641_v33 }
 0x75b   : > { %v1844_v58 = vadd.f32 %v1843_v5, %v1829_v30  ;;  %vm2174_vm9 = vcmp.eq.s32.totalorder %v2026_v59, %v2907_v16  ;;  %v1644_v0 = vshll.u32 %v1643_v28, 16 }
 0x75c   : > { %v2471_v55 = vsel %vm2174_vm9, 1.0, %v4368_v2  ;;  %v2034_v57 = vpop.xlane.xlu0 %2033  ;;  %v4163_v36 = vpop.xlane.xlu1 %1686 }
 0x75d   : > { %v2222_v3 = vmul.f32 %v2471_v55, %v3752_v17  ;;  %v1645_v25 = vadd.s32 %v1644_v0, %v1642_v14  ;;  %v2036_v38 = vcvt.f32.s32 %v2034_v57 }
 0x75f   : > { %v2237_v24 = vadd.f32 %v2236_v15, %v2222_v3  ;;  %vm1782_vm2 = vcmp.eq.s32.totalorder %v1645_v25, %v2907_v16  ;;  %v2037_v52 = vshll.u32 %v2036_v38, 16 }
 0x760   : > { %v2456_v35 = vsel %vm1782_vm2, 1.0, %v4368_v2  ;;  %v1653_v5 = vpop.xlane.xlu0 %1652  ;;  %v4170_v27 = vpop.xlane.xlu1 %2079 }
 0x761   : > { %v1830_v20 = vmul.f32 %v2456_v35, %v3775_v40  ;;  %v2038_v22 = vadd.s32 %v2037_v52, %v2035_v6  ;;  %v1655_v46 = vcvt.f32.s32 %v1653_v5  ;;  %v2047_v5 = vcvt.f32.s32 %v4141_v7 }
 0x763   : > { %v1845_v17 = vadd.f32 %v1844_v58, %v1830_v20  ;;  %vm2175_vm11 = vcmp.eq.s32.totalorder %v2038_v22, %v2907_v16  ;;  %v1656_v51 = vshll.u32 %v1655_v46, 16 }
 0x764   : > { %v2472_v13 = vsel %vm2175_vm11, 1.0, %v4368_v2  ;;  %v2046_v15 = vpop.xlane.xlu0 %2045  ;;  %v4180_v63 = vpop.xlane.xlu1 %1698 }
 0x765   : > { %v2223_v41 = vmul.f32 %v2472_v13, %v3777_v37  ;;  %v1657_v1 = vadd.s32 %v1656_v51, %v1654_v8  ;;  %v2048_v38 = vcvt.f32.s32 %v2046_v15  ;;  %v1666_v15 = vcvt.f32.s32 %v4146_v44 }
 0x766   : > { %v4450_v44 = vmov 0.0  }
 0x767   : > { %v4176_v4 = vadd.f32 %v2237_v24, %v2223_v41  ;;  %vm1783_vm15 = vcmp.eq.s32.totalorder %v1657_v1, %v2907_v16  ;;  %v2049_v24 = vshll.u32 %v2048_v38, 16 }
 0x768   : > { %v2457_v40 = vsel %vm1783_vm15, 1.0, %v4368_v2  ;;  %v1665_v39 = vpop.xlane.xlu0 %1664  ;;  %v4185_v59 = vpop.xlane.xlu1 %2091 }
 0x769   : > { %v1831_v61 = vmul.f32 %v2457_v40, %v3805_v47  ;;  %v1667_v52 = vcvt.f32.s32 %v1665_v39  ;;  %v2050_v8 = vadd.s32 %v2049_v24, %v2047_v5  ;;  %v2059_v40 = vcvt.f32.s32 %v4148_v31 }
 0x76a   : > { %v1678_v39 = vcvt.f32.s32 %v4153_v9 }
 0x76b   : > { %v4183_v33 = vadd.f32 %v1845_v17, %v1831_v61  ;;  %v1668_v17 = vshll.u32 %v1667_v52, 16  ;;  %vm2176_vm10 = vcmp.eq.s32.totalorder %v2050_v8, %v2907_v16 }
 0x76c   : > { %v2058_v30 = vpop.xlane.xlu0 %2057  ;;  %v4187_v14 = vpop.xlane.xlu1 %1710 }
 0x76d   : > { %v2060_v35 = vcvt.f32.s32 %v2058_v30  ;;  %v1669_v7 = vadd.s32 %v1668_v17, %v1666_v15 }
 0x76f   : > { %v2061_v51 = vshll.u32 %v2060_v35, 16  ;;  %v2473_v35 = vsel %vm2176_vm10, 1.0, %v4450_v44  ;;  %vm1784_vm6 = vcmp.eq.s32.totalorder %v1669_v7, %v2907_v16 }
 0x770   : > { %v1677_v28 = vpop.xlane.xlu0 %1676  ;;  %v4189_v0 = vpop.xlane.xlu1 %2103 }
 0x771   : > { %v1679_v20 = vcvt.f32.s32 %v1677_v28  ;;  %v2062_v30 = vadd.s32 %v2061_v51, %v2059_v40  ;;  %v1702_v40 = vcvt.f32.s32 %v4180_v63 }
 0x773   : > { %v1680_v1 = vshll.u32 %v1679_v20, 16  ;;  %vm2177_vm12 = vcmp.eq.s32.totalorder %v2062_v30, %v2907_v16 }
 0x774   : > { %v2070_v37 = vpop.xlane.xlu0 %2069  ;;  %v4191_v57 = vpop.xlane.xlu1 %1722 }
 0x775   : > { %v2072_v13 = vcvt.f32.s32 %v2070_v37  ;;  %v1681_v24 = vadd.s32 %v1680_v1, %v1678_v39  ;;  %v2071_v37 = vcvt.f32.s32 %v4157_v43  ;;  %v2083_v43 = vcvt.f32.s32 %v4170_v27 }
 0x777   : > { %v2073_v28 = vshll.u32 %v2072_v13, 16  ;;  %vm1785_vm1 = vcmp.eq.s32.totalorder %v1681_v24, %v2907_v16  ;;  %v2458_v13 = vsel %vm1784_vm6, 1.0, %v4450_v44 }
 0x778   : > { %v1689_v58 = vpop.xlane.xlu0 %1688  ;;  %v4195_v47 = vpop.xlane.xlu1 %2115  ;;  %v2459_v1 = vsel %vm1785_vm1, 1.0, %v4450_v44  ;;  %v1832_v27 = vmul.f32 %v2458_v13, %v3838_v32 }
 0x779   : > { %v1691_v41 = vcvt.f32.s32 %v1689_v58  ;;  %v1690_v58 = vcvt.f32.s32 %v4163_v36  ;;  %v2074_v31 = vadd.s32 %v2073_v28, %v2071_v37  ;;  %v2224_v36 = vmul.f32 %v2473_v35, %v3813_v23 }
 0x77a   : > { %v2095_v23 = vcvt.f32.s32 %v4185_v59  ;;  %v1833_v37 = vmul.f32 %v2459_v1, %v3869_v10 }
 0x77b   : > { %v1692_v38 = vshll.u32 %v1691_v41, 16  ;;  %v2474_v41 = vsel %vm2177_vm12, 1.0, %v4450_v44  ;;  %vm2178_vm14 = vcmp.eq.s32.totalorder %v2074_v31, %v2907_v16  ;;  %v2239_v30 = vadd.f32 %v4176_v4, %v2224_v36 }
 0x77c   : > { %v2082_v55 = vpop.xlane.xlu0 %2081  ;;  %v4198_v22 = vpop.xlane.xlu1 %1734  ;;  %v2225_v28 = vmul.f32 %v2474_v41, %v3855_v49  ;;  %v2475_v63 = vsel %vm2178_vm14, 1.0, %v4450_v44  ;;  %v1726_v31 = vcvt.f32.s32 %v4191_v57 }
 0x77d   : > { %v1693_v9 = vadd.s32 %v1692_v38, %v1690_v58  ;;  %v2084_v5 = vcvt.f32.s32 %v2082_v55  ;;  %v1714_v38 = vcvt.f32.s32 %v4187_v14  ;;  %v1847_v14 = vadd.f32 %v4183_v33, %v1832_v27 }
 0x77e   : > { %v2226_v36 = vmul.f32 %v2475_v63, %v3882_v54  ;;  %v1738_v13 = vcvt.f32.s32 %v4198_v22 }
 0x77f   : > { %vm1786_vm5 = vcmp.eq.s32.totalorder %v1693_v9, %v2907_v16  ;;  %v2085_v55 = vshll.u32 %v2084_v5, 16  ;;  %v1848_v9 = vadd.f32 %v1847_v14, %v1833_v37 }
 0x780   : > { %v1701_v3 = vpop.xlane.xlu0 %1700  ;;  %v4206_v2 = vpop.xlane.xlu1 %2127  ;;  %v2460_v32 = vsel %vm1786_vm5, 1.0, %v4450_v44 }
 0x781   : > { %v1703_v20 = vcvt.f32.s32 %v1701_v3  ;;  %v2086_v4 = vadd.s32 %v2085_v55, %v2083_v43  ;;  %v1834_v43 = vmul.f32 %v2460_v32, %v3895_v50  ;;  %v2131_v27 = vcvt.f32.s32 %v4206_v2 }
 0x783   : > { %v1704_v3 = vshll.u32 %v1703_v20, 16  ;;  %v2240_v20 = vadd.f32 %v2239_v30, %v2225_v28  ;;  %vm2179_vm3 = vcmp.eq.s32.totalorder %v2086_v4, %v2907_v16  ;;  %v1849_v22 = vadd.f32 %v1848_v9, %v1834_v43 }
 0x784   : > { %v4193_v25 = vpop.xlane.xlu0 %2093  ;;  %v4214_v17 = vpop.xlane.xlu1 %1746 }
 0x788   : > { %v1713_v6 = vpop.xlane.xlu0 %1712  ;;  %v4238_v59 = vpop.xlane.xlu1 %2139 }
 0x789   : > { %v1715_v8 = vcvt.f32.s32 %v1713_v6  ;;  %v2096_v6 = vcvt.f32.s32 %v4193_v25  ;;  %v2107_v25 = vcvt.f32.s32 %v4189_v0  ;;  %v2143_v4 = vcvt.f32.s32 %v4238_v59 }
 0x78b   : > { %v1716_v15 = vshll.u32 %v1715_v8, 16  ;;  %v2097_v49 = vshll.u32 %v2096_v6, 16 }
 0x78c   : > { %v4200_v46 = vpop.xlane.xlu0 %2105 }
 0x78d   : > { %v1717_v58 = vadd.s32 %v1716_v15, %v1714_v38  ;;  %v2108_v10 = vcvt.f32.s32 %v4200_v46  ;;  %v2098_v33 = vadd.s32 %v2097_v49, %v2095_v23  ;;  %v2241_v15 = vadd.f32 %v2240_v20, %v2226_v36 }
 0x78f   : > { %vm1788_vm0 = vcmp.eq.s32.totalorder %v1717_v58, %v2907_v16  ;;  %v2109_v46 = vshll.u32 %v2108_v10, 16  ;;  %vm2180_vm7 = vcmp.eq.s32.totalorder %v2098_v33, %v2907_v16 }
 0x790   : > { %v1725_v61 = vpop.xlane.xlu0 %1724 }
 0x791   : > { %v1727_v39 = vcvt.f32.s32 %v1725_v61  ;;  %v1705_v61 = vadd.s32 %v1704_v3, %v1702_v40  ;;  %v2119_v3 = vcvt.f32.s32 %v4195_v47  ;;  %v2476_v40 = vsel %vm2179_vm3, 1.0, %v4450_v44 }
 0x792   : > { %v2462_v47 = vsel %vm1788_vm0, 1.0, %v4450_v44  ;;  %v2227_v63 = vmul.f32 %v2476_v40, %v3909_v56 }
 0x793   : > { %v1728_v35 = vshll.u32 %v1727_v39, 16  ;;  %vm1787_vm4 = vcmp.eq.s32.totalorder %v1705_v61, %v2907_v16  ;;  %v1750_v39 = vcvt.f32.s32 %v4214_v17  ;;  %v2477_v17 = vsel %vm2180_vm7, 1.0, %v4450_v44 }
 0x794   : > { %v2118_v52 = vpop.xlane.xlu0 %2117  ;;  %v2461_v23 = vsel %vm1787_vm4, 1.0, %v4450_v44 }
 0x795   : > { %v2120_v0 = vcvt.f32.s32 %v2118_v52  ;;  %v1759_v52 = vpop.xlane.xlu1 %1758  ;;  %v1729_v41 = vadd.s32 %v1728_v35, %v1726_v31  ;;  %v1835_v32 = vmul.f32 %v2461_v23, %v3923_v42 }
 0x796   : > { %v1762_v49 = vcvt.f32.s32 %v1759_v52 }
 0x797   : > { %v2121_v57 = vshll.u32 %v2120_v0, 16  ;;  %vm1789_vm8 = vcmp.eq.s32.totalorder %v1729_v41, %v2907_v16  ;;  %v1850_v20 = vadd.f32 %v1849_v22, %v1835_v32 }
 0x798   : > { %v1737_v51 = vpop.xlane.xlu0 %1736  ;;  %v2463_v58 = vsel %vm1789_vm8, 1.0, %v4450_v44 }
 0x799   : > { %v1739_v24 = vcvt.f32.s32 %v1737_v51  ;;  %v2122_v30 = vadd.s32 %v2121_v57, %v2119_v3  ;;  %v2152_v61 = vpop.xlane.xlu1 %2151  ;;  %v1837_v31 = vmul.f32 %v2463_v58, %v3979_v12 }
 0x79b   : > { %v1740_v8 = vshll.u32 %v1739_v24, 16  ;;  %vm2182_vm2 = vcmp.eq.s32.totalorder %v2122_v30, %v2907_v16 }
 0x79c   : > { %v2130_v7 = vpop.xlane.xlu0 %2129  ;;  %v2479_v43 = vsel %vm2182_vm2, 1.0, %v4450_v44 }
 0x79d   : > { %v2132_v1 = vcvt.f32.s32 %v2130_v7  ;;  %v1741_v54 = vadd.s32 %v1740_v8, %v1738_v13  ;;  %v2110_v7 = vadd.s32 %v2109_v46, %v2107_v25  ;;  %v1836_v25 = vmul.f32 %v2462_v47, %v3951_v53  ;;  %v1771_v13 = vpop.xlane.xlu1 %1770 }
 0x79e   : > { %v2228_v53 = vmul.f32 %v2477_v17, %v3937_v18  ;;  %v1774_v3 = vcvt.f32.s32 %v1771_v13 }
 0x79f   : > { %v2133_v28 = vshll.u32 %v2132_v1, 16  ;;  %vm1790_vm13 = vcmp.eq.s32.totalorder %v1741_v54, %v2907_v16  ;;  %vm2181_vm9 = vcmp.eq.s32.totalorder %v2110_v7, %v2907_v16  ;;  %v1851_v36 = vadd.f32 %v1850_v20, %v1836_v25 }
 0x7a0   : > { %v1749_v5 = vpop.xlane.xlu0 %1748  ;;  %v2464_v10 = vsel %vm1790_vm13, 1.0, %v4450_v44  ;;  %v2478_v8 = vsel %vm2181_vm9, 1.0, %v4450_v44 }
 0x7a1   : > { %v1751_v51 = vcvt.f32.s32 %v1749_v5  ;;  %v2134_v56 = vadd.s32 %v2133_v28, %v2131_v27  ;;  %v2242_v5 = vadd.f32 %v2241_v15, %v2227_v63  ;;  %v1838_v33 = vmul.f32 %v2464_v10, %v4007_v26 }
 0x7a2   : > { %v2229_v41 = vmul.f32 %v2478_v8, %v3965_v45  ;;  %v1852_v57 = vadd.f32 %v1851_v36, %v1837_v31 }
 0x7a3   : > { %v1752_v6 = vshll.u32 %v1751_v51, 16  ;;  %v2155_v51 = vcvt.f32.s32 %v2152_v61  ;;  %vm2183_vm10 = vcmp.eq.s32.totalorder %v2134_v56, %v2907_v16 }
 0x7a4   : > { %v2142_v55 = vpop.xlane.xlu0 %2141  ;;  %v2480_v15 = vsel %vm2183_vm10, 1.0, %v4450_v44 }
 0x7a5   : > { %v2144_v50 = vcvt.f32.s32 %v2142_v55  ;;  %v1753_v2 = vadd.s32 %v1752_v6, %v1750_v39  ;;  %v2243_v55 = vadd.f32 %v2242_v5, %v2228_v53  ;;  %v2230_v6 = vmul.f32 %v2479_v43, %v3993_v62 }
 0x7a6   : > { %v2231_v47 = vmul.f32 %v2480_v15, %v4021_v60 }
 0x7a7   : > { %v2145_v24 = vshll.u32 %v2144_v50, 16  ;;  %vm1791_vm11 = vcmp.eq.s32.totalorder %v1753_v2, %v2907_v16  ;;  %v1853_v50 = vadd.f32 %v1852_v57, %v1838_v33  ;;  %v2244_v39 = vadd.f32 %v2243_v55, %v2229_v41 }
 0x7a8   : > { %v1761_v38 = vpop.xlane.xlu0 %1760  ;;  %v2465_v18 = vsel %vm1791_vm11, 1.0, %v4450_v44 }
 0x7a9   : > { %v1763_v37 = vcvt.f32.s32 %v1761_v38  ;;  %v2146_v42 = vadd.s32 %v2145_v24, %v2143_v4  ;;  %v1839_v26 = vmul.f32 %v2465_v18, %v4035_v21  ;;  %v2245_v21 = vadd.f32 %v2244_v39, %v2230_v6 }
 0x7ab   : > { %v1764_v14 = vshll.u32 %v1763_v37, 16  ;;  %vm2184_vm6 = vcmp.eq.s32.totalorder %v2146_v42, %v2907_v16  ;;  %v1854_v7 = vadd.f32 %v1853_v50, %v1839_v26  ;;  %v2246_v63 = vadd.f32 %v2245_v21, %v2231_v47 }
 0x7ac   : > { %v2154_v35 = vpop.xlane.xlu0 %2153  ;;  %v2481_v22 = vsel %vm2184_vm6, 1.0, %v4450_v44 }
 0x7ad   : > { %v1765_v0 = vadd.s32 %v1764_v14, %v1762_v49  ;;  %v2156_v59 = vcvt.f32.s32 %v2154_v35  ;;  %v2232_v62 = vmul.f32 %v2481_v22, %v4049_v29 }
 0x7af   : > { %vm1792_vm15 = vcmp.eq.s32.totalorder %v1765_v0, %v2907_v16  ;;  %v2157_v9 = vshll.u32 %v2156_v59, 16  ;;  %v2247_v4 = vadd.f32 %v2246_v63, %v2232_v62 }
 0x7b0   : > { %v1773_v46 = vpop.xlane.xlu0 %1772  ;;  %v2466_v1 = vsel %vm1792_vm15, 1.0, %v4450_v44 }
 0x7b1   : > { %v2158_v12 = vadd.s32 %v2157_v9, %v2155_v51  ;;  %v1775_v52 = vcvt.f32.s32 %v1773_v46  ;;  %v1840_v27 = vmul.f32 %v2466_v1, %v4063_v48 }
 0x7b3   : > { %v1776_v54 = vshll.u32 %v1775_v52, 16  ;;  %vm2185_vm12 = vcmp.eq.s32.totalorder %v2158_v12, %v2907_v16  ;;  %v1855_v2 = vadd.f32 %v1854_v7, %v1840_v27 }
 0x7b4   : > { %v2166_v40 = vpop.xlane.xlu0 %2165  ;;  %v2482_v30 = vsel %vm2185_vm12, 1.0, %v4450_v44 }
 0x7b5   : > { %v1777_v45 = vadd.s32 %v1776_v54, %v1774_v3  ;;  %v2168_v23 = vcvt.f32.s32 %v2166_v40  ;;  %v2233_v60 = vmul.f32 %v2482_v30, %v4077_v19 }
 0x7b7   : > { %vm1793_vm1 = vcmp.eq.s32.totalorder %v1777_v45, %v2907_v16  ;;  %v2169_v24 = vshll.u32 %v2168_v23, 16  ;;  %v2248_v25 = vadd.f32 %v2247_v4, %v2233_v60 }
 0x7b8   : > { %v2467_v28 = vsel %vm1793_vm1, 1.0, %v4450_v44  ;;  %v2164_v38 = vpop.xlane.xlu0 %2163 }
 0x7b9   : > { %v1841_v48 = vmul.f32 %v2467_v28, %v4088_v11  ;;  %v2167_v37 = vcvt.f32.s32 %v2164_v38 }
 0x7bb   : > { %v1856_v32 = vadd.f32 %v1855_v2, %v1841_v48  ;;  %v2170_v17 = vadd.s32 %v2169_v24, %v2167_v37 }
 0x7bd   : > { %v1857_v61 = vrot.slane %v1856_v32, 4  ;;  %vm2186_vm14 = vcmp.eq.s32.totalorder %v2170_v17, %v2907_v16 }
 0x7be   : > { %v2483_v29 = vsel %vm2186_vm14, 1.0, %v4450_v44 }
 0x7bf   : > { %v2234_v49 = vmul.f32 %v2483_v29, %v4112_v34  ;;  %v1858_v58 = vadd.f32 %v1857_v61, %v1856_v32 }
 0x7c0   : > { %v2264_v14 = vpop.permute.xlu0 %2263 }
 0x7c1   : > { %v2249_v11 = vadd.f32 %v2248_v25, %v2234_v49  ;;  %v1859_v10 = vrot.slane %v1858_v58, 2  ;;  %2266 = vst [vmem:[%s2823_s27] sm:$0xff] %v2264_v14 }
 0x7c3   : > { %v2250_v56 = vrot.slane %v2249_v11, 4  ;;  %v1860_v35 = vadd.f32 %v1859_v10, %v1858_v58 }
 0x7c5   : > { %v2251_v19 = vadd.f32 %v2250_v56, %v2249_v11  ;;  %v1861_v0 = vrot.slane %v1860_v35, 1 }
 0x7c7   : > { %v2252_v42 = vrot.slane %v2251_v19, 2  ;;  %v1862_v20 = vadd.f32 %v1861_v0, %v1860_v35 }
 0x7c9   : > { %v2253_v59 = vadd.f32 %v2252_v42, %v2251_v19 }
 0x7cb   : > { %v2254_v5 = vrot.slane %v2253_v59, 1 }
 0x7cd   : > { %v2255_v16 = vadd.f32 %v2254_v5, %v2253_v59 }
 0x7cf   : > { %v2256_v53 = vsub.f32 %v1862_v20, %v2255_v16 }
 0x7d1   : > { %v2257_v44 = vmul.f32 %v2256_v53, %v2256_v53 }
 0x7d3   : > { %2258 = vadd.xlane.f32.xlu1 %v2257_v44 }
 0x860   : > { %v2259_v31 = vpop.xlane.xlu1 %2258 }
 0x861   : > { %2260 = vst [vmem:[%s190_s24] sm:$0x1] %v2259_v31 }
 0x862 PF: > { %s14_s12 = sadd.s32 1, %s2745_s12  }
 0x863   : > { %p11_p5 = scmp.ge.s32.totalorder %s14_s12, 4  }
 0x865   :  { %13 = sbr.rel (!%p11_p5) target bundleno = 1 (0x1), region = 91 }

</bundles_post_ra>
